<compile_context>
chip_gen: v7x
topology: tpu7x:2x2x1
jax: 0.10.0
libtpu: 0.0.40
codegen_flags: <defaults>
</compile_context>

<pallas_src>
import functools

import jax
import jax.numpy as jnp
from jax.experimental import pallas as pl
from jax.experimental.pallas import tpu as pltpu


def _round_up(x, m):
    return (x + m - 1) // m * m


# ---------------------------------------------------------------------------
# LSTM decoder kernel: single invocation, input projection hoisted out of the
# recurrence, h/c carried in VMEM scratch.
# ---------------------------------------------------------------------------
def lstm_kernel(x_ref, wx_ref, wh_ref, b_ref, out_ref, gx_sc, h_sc, c_sc, *,
                n_pad):
    h_p = h_sc.shape[1]
    n_steps = x_ref.shape[0] // n_pad

    # One big MXU matmul for the input projection (no sequential dependency).
    gx_sc[...] = (jnp.dot(x_ref[...], wx_ref[...],
                          preferred_element_type=jnp.float32) + b_ref[...])

    h_sc[...] = jnp.zeros_like(h_sc)
    c_sc[...] = jnp.zeros_like(c_sc)

    def step(t, carry):
        row = pl.multiple_of(t * n_pad, n_pad)
        gates = gx_sc[pl.ds(row, n_pad), :] + jnp.dot(
            h_sc[...].astype(wh_ref.dtype), wh_ref[...],
            preferred_element_type=jnp.float32)
        # PyTorch nn.LSTM gate order i, f, g, o; each block is Hp=128k lanes,
        # so every slice is lane-aligned (no cross-lane relayout).
        i = jax.nn.sigmoid(gates[:, 0 * h_p:1 * h_p])
        f = jax.nn.sigmoid(gates[:, 1 * h_p:2 * h_p])
        g = jnp.tanh(gates[:, 2 * h_p:3 * h_p])
        o = jax.nn.sigmoid(gates[:, 3 * h_p:4 * h_p])
        c = f * c_sc[...] + i * g
        h = o * jnp.tanh(c)
        c_sc[...] = c
        h_sc[...] = h
        out_ref[pl.ds(row, n_pad), :] = h
        return carry

    jax.lax.fori_loop(0, n_steps, step, 0, unroll=True)


def run_lstm(x2d, wx, wh, b, n_pad):
    rows, _ = x2d.shape
    h_p = wh.shape[0]
    return pl.pallas_call(
        functools.partial(lstm_kernel, n_pad=n_pad),
        out_shape=jax.ShapeDtypeStruct((rows, h_p), jnp.float32),
        scratch_shapes=[
            pltpu.VMEM((rows, 4 * h_p), jnp.float32),   # precomputed x-gates
            pltpu.VMEM((n_pad, h_p), jnp.float32),      # h state
            pltpu.VMEM((n_pad, h_p), jnp.float32),      # c state
        ],
    )(x2d, wx, wh, b)


# ---------------------------------------------------------------------------
# Fused Tanh + Linear(H->V) + masked cross-entropy. Row-tiled; the logits for
# a tile never leave VMEM. Loss sum / token count accumulate across tiles.
# ---------------------------------------------------------------------------
def proj_ce_kernel(h_ref, wp_ref, bp_ref, tgt_ref, mask_ref, loss_ref,
                   sum_sc, cnt_sc):
    step = pl.program_id(0)

    @pl.when(step == 0)
    def _():
        sum_sc[...] = jnp.zeros_like(sum_sc)
        cnt_sc[...] = jnp.zeros_like(cnt_sc)

    x = jnp.tanh(h_ref[...])                                    # (TR, Hp) f32
    logits = (jnp.dot(x.astype(wp_ref.dtype), wp_ref[...],
                      preferred_element_type=jnp.float32)
              + bp_ref[...])                                    # (TR, Vp) f32
    m = jnp.max(logits, axis=-1, keepdims=True)
    lse = m + jnp.log(jnp.sum(jnp.exp(logits - m), axis=-1, keepdims=True))
    col = jax.lax.broadcasted_iota(jnp.int32, logits.shape, 1)
    tgt_logit = jnp.sum(jnp.where(col == tgt_ref[...], logits, 0.0),
                        axis=-1, keepdims=True)                 # (TR, 1)
    mask = mask_ref[...]
    per_tok = (lse - tgt_logit) * mask
    sum_sc[...] += jnp.sum(per_tok, axis=0, keepdims=True)
    cnt_sc[...] += jnp.sum(mask, axis=0, keepdims=True)

    @pl.when(step == pl.num_programs(0) - 1)
    def _():
        loss_ref[...] = sum_sc[...] / jnp.maximum(cnt_sc[...], 1.0)


def run_proj_ce(dec, w_proj, b_proj, tgt, mask, tile_rows=256):
    rows, h_p = dec.shape
    v_p = w_proj.shape[1]
    tr = min(tile_rows, rows)
    rows_p = _round_up(rows, tr)
    if rows_p != rows:
        pad = rows_p - rows
        dec = jnp.pad(dec, ((0, pad), (0, 0)))
        tgt = jnp.pad(tgt, ((0, pad), (0, 0)))
        mask = jnp.pad(mask, ((0, pad), (0, 0)))
    return pl.pallas_call(
        proj_ce_kernel,
        out_shape=jax.ShapeDtypeStruct((1, 1), jnp.float32),
        grid=(rows_p // tr,),
        in_specs=[
            pl.BlockSpec((tr, h_p), lambda i: (i, 0)),
            pl.BlockSpec((h_p, v_p), lambda i: (0, 0)),
            pl.BlockSpec((1, v_p), lambda i: (0, 0)),
            pl.BlockSpec((tr, 1), lambda i: (i, 0)),
            pl.BlockSpec((tr, 1), lambda i: (i, 0)),
        ],
        out_specs=pl.BlockSpec((1, 1), lambda i: (0, 0)),
        scratch_shapes=[pltpu.VMEM((1, 1), jnp.float32),
                        pltpu.VMEM((1, 1), jnp.float32)],
        # Sequential accumulation across row tiles (scratch carry) => arbitrary.
        compiler_params=pltpu.CompilerParams(
            dimension_semantics=("arbitrary",)),
    )(dec, w_proj, b_proj, tgt, mask)


# ---------------------------------------------------------------------------
# LM forward (glue in plain JAX: token transpose, embedding gather, padding)
# ---------------------------------------------------------------------------
@jax.jit
def lm_forward(params, inputs, inputs_length, targets, targets_length):
    n, t = inputs.shape
    n_pad = _round_up(max(n, 8), 8)
    pad_n = n_pad - n
    inputs_p = jnp.pad(inputs, ((0, pad_n), (0, 0)))
    targets_p = jnp.pad(targets, ((0, pad_n), (0, 0)))
    len_p = jnp.pad(inputs_length, (0, pad_n))      # padded rows get length 0

    # Time-major gather: transpose the tiny int token matrix, not the float
    # activations, so no HBM transpose of (T,N,E)/(T,N,H) is ever needed.
    emb_t = params["embedding"][inputs_p.T]                     # (T, Np, E) bf16
    x2d = emb_t.reshape(t * n_pad, -1)                          # (T*Np, E)

    dec = run_lstm(x2d, params["wx"], params["wh"], params["b_lstm"], n_pad)

    # Masked mean over valid tokens == CrossEntropyLoss over the concatenation
    # of valid prefixes (row order is irrelevant for a mean).
    # TODO(synk): if inputs_length != targets_length the original concat-based
    # pairing has no well-defined dense equivalent; we assume equal lengths.
    del targets_length
    mask = (jnp.arange(t)[:, None] < len_p[None, :]).astype(jnp.float32)
    mask = mask.reshape(t * n_pad, 1)
    tgt = targets_p.T.reshape(t * n_pad, 1).astype(jnp.int32)

    loss = run_proj_ce(dec, params["w_proj"], params["b_proj"], tgt, mask)
    return loss[0, 0]


# ---------------------------------------------------------------------------
# Deterministic parameter init (shapes implied by the module's __init__),
# padded to TPU-friendly layouts.
# ---------------------------------------------------------------------------
def init_params(key, vocab_size, embed_size, hidden_size):
    h_pad = _round_up(hidden_size, 128)
    v_pad = _round_up(vocab_size, 128)
    ks = jax.random.split(key, 8)
    k = 1.0 / jnp.sqrt(hidden_size)
    emb = jax.random.normal(ks[0], (vocab_size, embed_size), jnp.float32)
    # nn.LSTM(E, H): weight_ih (4H,E), weight_hh (4H,H), b_ih (4H,), b_hh (4H,)
    w_ih = jax.random.uniform(ks[1], (4 * hidden_size, embed_size), jnp.float32, -k, k)
    w_hh = jax.random.uniform(ks[2], (4 * hidden_size, hidden_size), jnp.float32, -k, k)
    b_ih = jax.random.uniform(ks[3], (4 * hidden_size,), jnp.float32, -k, k)
    b_hh = jax.random.uniform(ks[4], (4 * hidden_size,), jnp.float32, -k, k)
    # nn.Linear(dec.output_size=H, vocab_size)
    w_lin = jax.random.uniform(ks[5], (vocab_size, hidden_size), jnp.float32, -k, k)
    b_lin = jax.random.uniform(ks[6], (vocab_size,), jnp.float32, -k, k)

    # Pad each gate block H -> Hp so in-kernel gate slices are whole 128-lane
    # blocks. Zero weights/bias on padded units keep padded hidden state
    # identically 0 (i=f=o=0.5, g=0 => c=h=0 forever).
    wx = jnp.zeros((embed_size, 4 * h_pad), jnp.float32)
    wh = jnp.zeros((h_pad, 4 * h_pad), jnp.float32)
    b = jnp.zeros((1, 4 * h_pad), jnp.float32)
    b_sum = b_ih + b_hh
    for g in range(4):
        wx = wx.at[:, g * h_pad:g * h_pad + hidden_size].set(
            w_ih[g * hidden_size:(g + 1) * hidden_size, :].T)
        wh = wh.at[:hidden_size, g * h_pad:g * h_pad + hidden_size].set(
            w_hh[g * hidden_size:(g + 1) * hidden_size, :].T)
        b = b.at[:, g * h_pad:g * h_pad + hidden_size].set(
            b_sum[g * hidden_size:(g + 1) * hidden_size][None, :])

    # Projection padded to (Hp, Vp): extra H rows are zero (padded h is 0
    # anyway); extra vocab columns get weight 0 / bias -1e30 so they vanish
    # from the logsumexp and can never be a target.
    w_proj = jnp.zeros((h_pad, v_pad), jnp.float32)
    w_proj = w_proj.at[:hidden_size, :vocab_size].set(w_lin.T)
    b_proj = jnp.full((1, v_pad), -1e30, jnp.float32)
    b_proj = b_proj.at[:, :vocab_size].set(b_lin[None, :])

    return {
        "embedding": emb.astype(jnp.bfloat16),     # (V, E)      bf16
        "wx": wx.astype(jnp.bfloat16),             # (E, 4*Hp)   bf16
        "wh": wh.astype(jnp.bfloat16),             # (Hp, 4*Hp)  bf16
        "b_lstm": b,                               # (1, 4*Hp)   f32
        "w_proj": w_proj.astype(jnp.bfloat16),     # (Hp, Vp)    bf16
        "b_proj": b_proj,                          # (1, Vp)     f32
    }


if __name__ == "__main__":
    N, T = 2, 8
    VOCAB, EMBED, HIDDEN = 16, 32, 32

    key = jax.random.PRNGKey(0)
    k_par, k_in, k_tg = jax.random.split(key, 3)
    params = init_params(k_par, VOCAB, EMBED, HIDDEN)

    inputs = jax.random.randint(k_in, (N, T), 0, VOCAB, dtype=jnp.int32)
    targets = jax.random.randint(k_tg, (N, T), 0, VOCAB, dtype=jnp.int32)
    inputs_length = jnp.array([8, 5], dtype=jnp.int32)
    targets_length = jnp.array([8, 5], dtype=jnp.int32)

    loss = lm_forward(params, inputs, inputs_length, targets, targets_length)
    jax.block_until_ready(loss)
    print("KERNEL_OK")
</pallas_src>

<mosaic_0001>
module attributes {stable_mosaic.version = 11 : i64} {
  func.func @lstm_kernel(%arg0: memref<64x32xbf16, #tpu.memory_space<vmem>>, %arg1: memref<32x512xbf16, #tpu.memory_space<vmem>>, %arg2: memref<128x512xbf16, #tpu.memory_space<vmem>>, %arg3: memref<1x512xf32, #tpu.memory_space<vmem>>, %arg4: memref<64x128xf32, #tpu.memory_space<vmem>>, %arg5: memref<64x512xf32, #tpu.memory_space<vmem>>, %arg6: memref<8x128xf32, #tpu.memory_space<vmem>>, %arg7: memref<8x128xf32, #tpu.memory_space<vmem>>) attributes {dimension_semantics = [], scalar_prefetch = 0 : i64, scratch_operands = 3 : i64, tpu.core_type = #tpu.core_type<tc>} {
    %c0 = arith.constant 0 : index
    %c0_0 = arith.constant 0 : index
    %0 = vector.load %arg0[%c0, %c0_0] : memref<64x32xbf16, #tpu.memory_space<vmem>>, vector<64x32xbf16>
    %c0_1 = arith.constant 0 : index
    %c0_2 = arith.constant 0 : index
    %1 = vector.load %arg1[%c0_1, %c0_2] : memref<32x512xbf16, #tpu.memory_space<vmem>>, vector<32x512xbf16>
    %cst = arith.constant dense<0.000000e+00> : vector<64x512xf32>
    %2 = tpu.matmul %0, %1, %cst {dimension_numbers = #tpu.dot_dimension_numbers<[1], [0], [0], [1], [0, 0, 1, 1], [], []>} : vector<64x32xbf16>, vector<32x512xbf16>, vector<64x512xf32> -> vector<64x512xf32>
    %c0_3 = arith.constant 0 : index
    %c0_4 = arith.constant 0 : index
    %3 = vector.load %arg3[%c0_3, %c0_4] : memref<1x512xf32, #tpu.memory_space<vmem>>, vector<1x512xf32>
    %4 = vector.broadcast %3 : vector<1x512xf32> to vector<64x512xf32>
    %5 = arith.addf %2, %4 : vector<64x512xf32>
    %c0_5 = arith.constant 0 : index
    %c0_6 = arith.constant 0 : index
    %6 = vector.load %arg5[%c0_5, %c0_6] : memref<64x512xf32, #tpu.memory_space<vmem>>, vector<64x512xf32>
    tpu.vector_store %arg5[%c0_5, %c0_6], %5 {strides = array<i32>} : memref<64x512xf32, #tpu.memory_space<vmem>>, vector<64x512xf32>,
    %cst_7 = arith.constant 0.000000e+00 : f32
    %7 = vector.broadcast %cst_7 : f32 to vector<8x128xf32>
    %c0_8 = arith.constant 0 : index
    %c0_9 = arith.constant 0 : index
    %8 = vector.load %arg6[%c0_8, %c0_9] : memref<8x128xf32, #tpu.memory_space<vmem>>, vector<8x128xf32>
    tpu.vector_store %arg6[%c0_8, %c0_9], %7 {strides = array<i32>} : memref<8x128xf32, #tpu.memory_space<vmem>>, vector<8x128xf32>,
    %cst_10 = arith.constant 0.000000e+00 : f32
    %9 = vector.broadcast %cst_10 : f32 to vector<8x128xf32>
    %c0_11 = arith.constant 0 : index
    %c0_12 = arith.constant 0 : index
    %10 = vector.load %arg7[%c0_11, %c0_12] : memref<8x128xf32, #tpu.memory_space<vmem>>, vector<8x128xf32>
    tpu.vector_store %arg7[%c0_11, %c0_12], %9 {strides = array<i32>} : memref<8x128xf32, #tpu.memory_space<vmem>>, vector<8x128xf32>,
    %c0_i32 = arith.constant 0 : i32
    %c8_i32 = arith.constant 8 : i32
    %11 = arith.muli %c0_i32, %c8_i32 : i32
    %12 = tpu.assume_multiple %11, 8 : i32
    %13 = arith.index_cast %12 : i32 to index
    %c0_13 = arith.constant 0 : index
    %14 = vector.load %arg5[%13, %c0_13] : memref<64x512xf32, #tpu.memory_space<vmem>>, vector<8x512xf32>
    %c0_14 = arith.constant 0 : index
    %c0_15 = arith.constant 0 : index
    %15 = vector.load %arg6[%c0_14, %c0_15] : memref<8x128xf32, #tpu.memory_space<vmem>>, vector<8x128xf32>
    %16 = arith.truncf %15 : vector<8x128xf32> to vector<8x128xbf16>
    %c0_16 = arith.constant 0 : index
    %c0_17 = arith.constant 0 : index
    %17 = vector.load %arg2[%c0_16, %c0_17] : memref<128x512xbf16, #tpu.memory_space<vmem>>, vector<128x512xbf16>
    %cst_18 = arith.constant dense<0.000000e+00> : vector<8x512xf32>
    %18 = tpu.matmul %16, %17, %cst_18 {dimension_numbers = #tpu.dot_dimension_numbers<[1], [0], [0], [1], [0, 0, 1, 1], [], []>} : vector<8x128xbf16>, vector<128x512xbf16>, vector<8x512xf32> -> vector<8x512xf32>
    %19 = arith.addf %14, %18 : vector<8x512xf32>
    %20 = vector.extract_strided_slice %19 {offsets = [0, 0], sizes = [8, 128], strides = [1, 1]} : vector<8x512xf32> to vector<8x128xf32>
    %21 = arith.negf %20 : vector<8x128xf32>
    %22 = math.exp %21 : vector<8x128xf32>
    %cst_19 = arith.constant 1.000000e+00 : f32
    %23 = vector.broadcast %cst_19 : f32 to vector<8x128xf32>
    %24 = arith.addf %23, %22 : vector<8x128xf32>
    %25 = arith.divf %23, %24 : vector<8x128xf32>
    %26 = vector.extract_strided_slice %19 {offsets = [0, 128], sizes = [8, 128], strides = [1, 1]} : vector<8x512xf32> to vector<8x128xf32>
    %27 = arith.negf %26 : vector<8x128xf32>
    %28 = math.exp %27 : vector<8x128xf32>
    %cst_20 = arith.constant 1.000000e+00 : f32
    %29 = vector.broadcast %cst_20 : f32 to vector<8x128xf32>
    %30 = arith.addf %29, %28 : vector<8x128xf32>
    %31 = arith.divf %29, %30 : vector<8x128xf32>
    %32 = vector.extract_strided_slice %19 {offsets = [0, 256], sizes = [8, 128], strides = [1, 1]} : vector<8x512xf32> to vector<8x128xf32>
    %33 = math.tanh %32 : vector<8x128xf32>
    %34 = vector.extract_strided_slice %19 {offsets = [0, 384], sizes = [8, 128], strides = [1, 1]} : vector<8x512xf32> to vector<8x128xf32>
    %35 = arith.negf %34 : vector<8x128xf32>
    %36 = math.exp %35 : vector<8x128xf32>
    %cst_21 = arith.constant 1.000000e+00 : f32
    %37 = vector.broadcast %cst_21 : f32 to vector<8x128xf32>
    %38 = arith.addf %37, %36 : vector<8x128xf32>
    %39 = arith.divf %37, %38 : vector<8x128xf32>
    %c0_22 = arith.constant 0 : index
    %c0_23 = arith.constant 0 : index
    %40 = vector.load %arg7[%c0_22, %c0_23] : memref<8x128xf32, #tpu.memory_space<vmem>>, vector<8x128xf32>
    %41 = arith.mulf %31, %40 : vector<8x128xf32>
    %42 = arith.mulf %25, %33 : vector<8x128xf32>
    %43 = arith.addf %41, %42 : vector<8x128xf32>
    %44 = math.tanh %43 : vector<8x128xf32>
    %45 = arith.mulf %39, %44 : vector<8x128xf32>
    %c0_24 = arith.constant 0 : index
    %c0_25 = arith.constant 0 : index
    %46 = vector.load %arg7[%c0_24, %c0_25] : memref<8x128xf32, #tpu.memory_space<vmem>>, vector<8x128xf32>
    tpu.vector_store %arg7[%c0_24, %c0_25], %43 {strides = array<i32>} : memref<8x128xf32, #tpu.memory_space<vmem>>, vector<8x128xf32>,
    %c0_26 = arith.constant 0 : index
    %c0_27 = arith.constant 0 : index
    %47 = vector.load %arg6[%c0_26, %c0_27] : memref<8x128xf32, #tpu.memory_space<vmem>>, vector<8x128xf32>
    tpu.vector_store %arg6[%c0_26, %c0_27], %45 {strides = array<i32>} : memref<8x128xf32, #tpu.memory_space<vmem>>, vector<8x128xf32>,
    %48 = arith.index_cast %12 : i32 to index
    %c0_28 = arith.constant 0 : index
    %49 = vector.load %arg4[%48, %c0_28] : memref<64x128xf32, #tpu.memory_space<vmem>>, vector<8x128xf32>
    tpu.vector_store %arg4[%48, %c0_28], %45 {strides = array<i32>} : memref<64x128xf32, #tpu.memory_space<vmem>>, vector<8x128xf32>,
    %c1_i32 = arith.constant 1 : i32
    %c8_i32_29 = arith.constant 8 : i32
    %50 = arith.muli %c1_i32, %c8_i32_29 : i32
    %51 = tpu.assume_multiple %50, 8 : i32
    %52 = arith.index_cast %51 : i32 to index
    %c0_30 = arith.constant 0 : index
    %53 = vector.load %arg5[%52, %c0_30] : memref<64x512xf32, #tpu.memory_space<vmem>>, vector<8x512xf32>
    %c0_31 = arith.constant 0 : index
    %c0_32 = arith.constant 0 : index
    %54 = vector.load %arg6[%c0_31, %c0_32] : memref<8x128xf32, #tpu.memory_space<vmem>>, vector<8x128xf32>
    %55 = arith.truncf %54 : vector<8x128xf32> to vector<8x128xbf16>
    %c0_33 = arith.constant 0 : index
    %c0_34 = arith.constant 0 : index
    %56 = vector.load %arg2[%c0_33, %c0_34] : memref<128x512xbf16, #tpu.memory_space<vmem>>, vector<128x512xbf16>
    %cst_35 = arith.constant dense<0.000000e+00> : vector<8x512xf32>
    %57 = tpu.matmul %55, %56, %cst_35 {dimension_numbers = #tpu.dot_dimension_numbers<[1], [0], [0], [1], [0, 0, 1, 1], [], []>} : vector<8x128xbf16>, vector<128x512xbf16>, vector<8x512xf32> -> vector<8x512xf32>
    %58 = arith.addf %53, %57 : vector<8x512xf32>
    %59 = vector.extract_strided_slice %58 {offsets = [0, 0], sizes = [8, 128], strides = [1, 1]} : vector<8x512xf32> to vector<8x128xf32>
    %60 = arith.negf %59 : vector<8x128xf32>
    %61 = math.exp %60 : vector<8x128xf32>
    %cst_36 = arith.constant 1.000000e+00 : f32
    %62 = vector.broadcast %cst_36 : f32 to vector<8x128xf32>
    %63 = arith.addf %62, %61 : vector<8x128xf32>
    %64 = arith.divf %62, %63 : vector<8x128xf32>
    %65 = vector.extract_strided_slice %58 {offsets = [0, 128], sizes = [8, 128], strides = [1, 1]} : vector<8x512xf32> to vector<8x128xf32>
    %66 = arith.negf %65 : vector<8x128xf32>
    %67 = math.exp %66 : vector<8x128xf32>
    %cst_37 = arith.constant 1.000000e+00 : f32
    %68 = vector.broadcast %cst_37 : f32 to vector<8x128xf32>
    %69 = arith.addf %68, %67 : vector<8x128xf32>
    %70 = arith.divf %68, %69 : vector<8x128xf32>
    %71 = vector.extract_strided_slice %58 {offsets = [0, 256], sizes = [8, 128], strides = [1, 1]} : vector<8x512xf32> to vector<8x128xf32>
    %72 = math.tanh %71 : vector<8x128xf32>
    %73 = vector.extract_strided_slice %58 {offsets = [0, 384], sizes = [8, 128], strides = [1, 1]} : vector<8x512xf32> to vector<8x128xf32>
    %74 = arith.negf %73 : vector<8x128xf32>
    %75 = math.exp %74 : vector<8x128xf32>
    %cst_38 = arith.constant 1.000000e+00 : f32
    %76 = vector.broadcast %cst_38 : f32 to vector<8x128xf32>
    %77 = arith.addf %76, %75 : vector<8x128xf32>
    %78 = arith.divf %76, %77 : vector<8x128xf32>
    %c0_39 = arith.constant 0 : index
    %c0_40 = arith.constant 0 : index
    %79 = vector.load %arg7[%c0_39, %c0_40] : memref<8x128xf32, #tpu.memory_space<vmem>>, vector<8x128xf32>
    %80 = arith.mulf %70, %79 : vector<8x128xf32>
    %81 = arith.mulf %64, %72 : vector<8x128xf32>
    %82 = arith.addf %80, %81 : vector<8x128xf32>
    %83 = math.tanh %82 : vector<8x128xf32>
    %84 = arith.mulf %78, %83 : vector<8x128xf32>
    %c0_41 = arith.constant 0 : index
    %c0_42 = arith.constant 0 : index
    %85 = vector.load %arg7[%c0_41, %c0_42] : memref<8x128xf32, #tpu.memory_space<vmem>>, vector<8x128xf32>
    tpu.vector_store %arg7[%c0_41, %c0_42], %82 {strides = array<i32>} : memref<8x128xf32, #tpu.memory_space<vmem>>, vector<8x128xf32>,
    %c0_43 = arith.constant 0 : index
    %c0_44 = arith.constant 0 : index
    %86 = vector.load %arg6[%c0_43, %c0_44] : memref<8x128xf32, #tpu.memory_space<vmem>>, vector<8x128xf32>
    tpu.vector_store %arg6[%c0_43, %c0_44], %84 {strides = array<i32>} : memref<8x128xf32, #tpu.memory_space<vmem>>, vector<8x128xf32>,
    %87 = arith.index_cast %51 : i32 to index
    %c0_45 = arith.constant 0 : index
    %88 = vector.load %arg4[%87, %c0_45] : memref<64x128xf32, #tpu.memory_space<vmem>>, vector<8x128xf32>
    tpu.vector_store %arg4[%87, %c0_45], %84 {strides = array<i32>} : memref<64x128xf32, #tpu.memory_space<vmem>>, vector<8x128xf32>,
    %c2_i32 = arith.constant 2 : i32
    %c8_i32_46 = arith.constant 8 : i32
    %89 = arith.muli %c2_i32, %c8_i32_46 : i32
    %90 = tpu.assume_multiple %89, 8 : i32
    %91 = arith.index_cast %90 : i32 to index
    %c0_47 = arith.constant 0 : index
    %92 = vector.load %arg5[%91, %c0_47] : memref<64x512xf32, #tpu.memory_space<vmem>>, vector<8x512xf32>
    %c0_48 = arith.constant 0 : index
    %c0_49 = arith.constant 0 : index
    %93 = vector.load %arg6[%c0_48, %c0_49] : memref<8x128xf32, #tpu.memory_space<vmem>>, vector<8x128xf32>
    %94 = arith.truncf %93 : vector<8x128xf32> to vector<8x128xbf16>
    %c0_50 = arith.constant 0 : index
    %c0_51 = arith.constant 0 : index
    %95 = vector.load %arg2[%c0_50, %c0_51] : memref<128x512xbf16, #tpu.memory_space<vmem>>, vector<128x512xbf16>
    %cst_52 = arith.constant dense<0.000000e+00> : vector<8x512xf32>
    %96 = tpu.matmul %94, %95, %cst_52 {dimension_numbers = #tpu.dot_dimension_numbers<[1], [0], [0], [1], [0, 0, 1, 1], [], []>} : vector<8x128xbf16>, vector<128x512xbf16>, vector<8x512xf32> -> vector<8x512xf32>
    %97 = arith.addf %92, %96 : vector<8x512xf32>
    %98 = vector.extract_strided_slice %97 {offsets = [0, 0], sizes = [8, 128], strides = [1, 1]} : vector<8x512xf32> to vector<8x128xf32>
    %99 = arith.negf %98 : vector<8x128xf32>
    %100 = math.exp %99 : vector<8x128xf32>
    %cst_53 = arith.constant 1.000000e+00 : f32
    %101 = vector.broadcast %cst_53 : f32 to vector<8x128xf32>
    %102 = arith.addf %101, %100 : vector<8x128xf32>
    %103 = arith.divf %101, %102 : vector<8x128xf32>
    %104 = vector.extract_strided_slice %97 {offsets = [0, 128], sizes = [8, 128], strides = [1, 1]} : vector<8x512xf32> to vector<8x128xf32>
    %105 = arith.negf %104 : vector<8x128xf32>
    %106 = math.exp %105 : vector<8x128xf32>
    %cst_54 = arith.constant 1.000000e+00 : f32
    %107 = vector.broadcast %cst_54 : f32 to vector<8x128xf32>
    %108 = arith.addf %107, %106 : vector<8x128xf32>
    %109 = arith.divf %107, %108 : vector<8x128xf32>
    %110 = vector.extract_strided_slice %97 {offsets = [0, 256], sizes = [8, 128], strides = [1, 1]} : vector<8x512xf32> to vector<8x128xf32>
    %111 = math.tanh %110 : vector<8x128xf32>
    %112 = vector.extract_strided_slice %97 {offsets = [0, 384], sizes = [8, 128], strides = [1, 1]} : vector<8x512xf32> to vector<8x128xf32>
    %113 = arith.negf %112 : vector<8x128xf32>
    %114 = math.exp %113 : vector<8x128xf32>
    %cst_55 = arith.constant 1.000000e+00 : f32
    %115 = vector.broadcast %cst_55 : f32 to vector<8x128xf32>
    %116 = arith.addf %115, %114 : vector<8x128xf32>
    %117 = arith.divf %115, %116 : vector<8x128xf32>
    %c0_56 = arith.constant 0 : index
    %c0_57 = arith.constant 0 : index
    %118 = vector.load %arg7[%c0_56, %c0_57] : memref<8x128xf32, #tpu.memory_space<vmem>>, vector<8x128xf32>
    %119 = arith.mulf %109, %118 : vector<8x128xf32>
    %120 = arith.mulf %103, %111 : vector<8x128xf32>
    %121 = arith.addf %119, %120 : vector<8x128xf32>
    %122 = math.tanh %121 : vector<8x128xf32>
    %123 = arith.mulf %117, %122 : vector<8x128xf32>
    %c0_58 = arith.constant 0 : index
    %c0_59 = arith.constant 0 : index
    %124 = vector.load %arg7[%c0_58, %c0_59] : memref<8x128xf32, #tpu.memory_space<vmem>>, vector<8x128xf32>
    tpu.vector_store %arg7[%c0_58, %c0_59], %121 {strides = array<i32>} : memref<8x128xf32, #tpu.memory_space<vmem>>, vector<8x128xf32>,
    %c0_60 = arith.constant 0 : index
    %c0_61 = arith.constant 0 : index
    %125 = vector.load %arg6[%c0_60, %c0_61] : memref<8x128xf32, #tpu.memory_space<vmem>>, vector<8x128xf32>
    tpu.vector_store %arg6[%c0_60, %c0_61], %123 {strides = array<i32>} : memref<8x128xf32, #tpu.memory_space<vmem>>, vector<8x128xf32>,
    %126 = arith.index_cast %90 : i32 to index
    %c0_62 = arith.constant 0 : index
    %127 = vector.load %arg4[%126, %c0_62] : memref<64x128xf32, #tpu.memory_space<vmem>>, vector<8x128xf32>
    tpu.vector_store %arg4[%126, %c0_62], %123 {strides = array<i32>} : memref<64x128xf32, #tpu.memory_space<vmem>>, vector<8x128xf32>,
    %c3_i32 = arith.constant 3 : i32
    %c8_i32_63 = arith.constant 8 : i32
    %128 = arith.muli %c3_i32, %c8_i32_63 : i32
    %129 = tpu.assume_multiple %128, 8 : i32
    %130 = arith.index_cast %129 : i32 to index
    %c0_64 = arith.constant 0 : index
    %131 = vector.load %arg5[%130, %c0_64] : memref<64x512xf32, #tpu.memory_space<vmem>>, vector<8x512xf32>
    %c0_65 = arith.constant 0 : index
    %c0_66 = arith.constant 0 : index
    %132 = vector.load %arg6[%c0_65, %c0_66] : memref<8x128xf32, #tpu.memory_space<vmem>>, vector<8x128xf32>
    %133 = arith.truncf %132 : vector<8x128xf32> to vector<8x128xbf16>
    %c0_67 = arith.constant 0 : index
    %c0_68 = arith.constant 0 : index
    %134 = vector.load %arg2[%c0_67, %c0_68] : memref<128x512xbf16, #tpu.memory_space<vmem>>, vector<128x512xbf16>
    %cst_69 = arith.constant dense<0.000000e+00> : vector<8x512xf32>
    %135 = tpu.matmul %133, %134, %cst_69 {dimension_numbers = #tpu.dot_dimension_numbers<[1], [0], [0], [1], [0, 0, 1, 1], [], []>} : vector<8x128xbf16>, vector<128x512xbf16>, vector<8x512xf32> -> vector<8x512xf32>
    %136 = arith.addf %131, %135 : vector<8x512xf32>
    %137 = vector.extract_strided_slice %136 {offsets = [0, 0], sizes = [8, 128], strides = [1, 1]} : vector<8x512xf32> to vector<8x128xf32>
    %138 = arith.negf %137 : vector<8x128xf32>
    %139 = math.exp %138 : vector<8x128xf32>
    %cst_70 = arith.constant 1.000000e+00 : f32
    %140 = vector.broadcast %cst_70 : f32 to vector<8x128xf32>
    %141 = arith.addf %140, %139 : vector<8x128xf32>
    %142 = arith.divf %140, %141 : vector<8x128xf32>
    %143 = vector.extract_strided_slice %136 {offsets = [0, 128], sizes = [8, 128], strides = [1, 1]} : vector<8x512xf32> to vector<8x128xf32>
    %144 = arith.negf %143 : vector<8x128xf32>
    %145 = math.exp %144 : vector<8x128xf32>
    %cst_71 = arith.constant 1.000000e+00 : f32
    %146 = vector.broadcast %cst_71 : f32 to vector<8x128xf32>
    %147 = arith.addf %146, %145 : vector<8x128xf32>
    %148 = arith.divf %146, %147 : vector<8x128xf32>
    %149 = vector.extract_strided_slice %136 {offsets = [0, 256], sizes = [8, 128], strides = [1, 1]} : vector<8x512xf32> to vector<8x128xf32>
    %150 = math.tanh %149 : vector<8x128xf32>
    %151 = vector.extract_strided_slice %136 {offsets = [0, 384], sizes = [8, 128], strides = [1, 1]} : vector<8x512xf32> to vector<8x128xf32>
    %152 = arith.negf %151 : vector<8x128xf32>
    %153 = math.exp %152 : vector<8x128xf32>
    %cst_72 = arith.constant 1.000000e+00 : f32
    %154 = vector.broadcast %cst_72 : f32 to vector<8x128xf32>
    %155 = arith.addf %154, %153 : vector<8x128xf32>
    %156 = arith.divf %154, %155 : vector<8x128xf32>
    %c0_73 = arith.constant 0 : index
    %c0_74 = arith.constant 0 : index
    %157 = vector.load %arg7[%c0_73, %c0_74] : memref<8x128xf32, #tpu.memory_space<vmem>>, vector<8x128xf32>
    %158 = arith.mulf %148, %157 : vector<8x128xf32>
    %159 = arith.mulf %142, %150 : vector<8x128xf32>
    %160 = arith.addf %158, %159 : vector<8x128xf32>
    %161 = math.tanh %160 : vector<8x128xf32>
    %162 = arith.mulf %156, %161 : vector<8x128xf32>
    %c0_75 = arith.constant 0 : index
    %c0_76 = arith.constant 0 : index
    %163 = vector.load %arg7[%c0_75, %c0_76] : memref<8x128xf32, #tpu.memory_space<vmem>>, vector<8x128xf32>
    tpu.vector_store %arg7[%c0_75, %c0_76], %160 {strides = array<i32>} : memref<8x128xf32, #tpu.memory_space<vmem>>, vector<8x128xf32>,
    %c0_77 = arith.constant 0 : index
    %c0_78 = arith.constant 0 : index
    %164 = vector.load %arg6[%c0_77, %c0_78] : memref<8x128xf32, #tpu.memory_space<vmem>>, vector<8x128xf32>
    tpu.vector_store %arg6[%c0_77, %c0_78], %162 {strides = array<i32>} : memref<8x128xf32, #tpu.memory_space<vmem>>, vector<8x128xf32>,
    %165 = arith.index_cast %129 : i32 to index
    %c0_79 = arith.constant 0 : index
    %166 = vector.load %arg4[%165, %c0_79] : memref<64x128xf32, #tpu.memory_space<vmem>>, vector<8x128xf32>
    tpu.vector_store %arg4[%165, %c0_79], %162 {strides = array<i32>} : memref<64x128xf32, #tpu.memory_space<vmem>>, vector<8x128xf32>,
    %c4_i32 = arith.constant 4 : i32
    %c8_i32_80 = arith.constant 8 : i32
    %167 = arith.muli %c4_i32, %c8_i32_80 : i32
    %168 = tpu.assume_multiple %167, 8 : i32
    %169 = arith.index_cast %168 : i32 to index
    %c0_81 = arith.constant 0 : index
    %170 = vector.load %arg5[%169, %c0_81] : memref<64x512xf32, #tpu.memory_space<vmem>>, vector<8x512xf32>
    %c0_82 = arith.constant 0 : index
    %c0_83 = arith.constant 0 : index
    %171 = vector.load %arg6[%c0_82, %c0_83] : memref<8x128xf32, #tpu.memory_space<vmem>>, vector<8x128xf32>
    %172 = arith.truncf %171 : vector<8x128xf32> to vector<8x128xbf16>
    %c0_84 = arith.constant 0 : index
    %c0_85 = arith.constant 0 : index
    %173 = vector.load %arg2[%c0_84, %c0_85] : memref<128x512xbf16, #tpu.memory_space<vmem>>, vector<128x512xbf16>
    %cst_86 = arith.constant dense<0.000000e+00> : vector<8x512xf32>
    %174 = tpu.matmul %172, %173, %cst_86 {dimension_numbers = #tpu.dot_dimension_numbers<[1], [0], [0], [1], [0, 0, 1, 1], [], []>} : vector<8x128xbf16>, vector<128x512xbf16>, vector<8x512xf32> -> vector<8x512xf32>
    %175 = arith.addf %170, %174 : vector<8x512xf32>
    %176 = vector.extract_strided_slice %175 {offsets = [0, 0], sizes = [8, 128], strides = [1, 1]} : vector<8x512xf32> to vector<8x128xf32>
    %177 = arith.negf %176 : vector<8x128xf32>
    %178 = math.exp %177 : vector<8x128xf32>
    %cst_87 = arith.constant 1.000000e+00 : f32
    %179 = vector.broadcast %cst_87 : f32 to vector<8x128xf32>
    %180 = arith.addf %179, %178 : vector<8x128xf32>
    %181 = arith.divf %179, %180 : vector<8x128xf32>
    %182 = vector.extract_strided_slice %175 {offsets = [0, 128], sizes = [8, 128], strides = [1, 1]} : vector<8x512xf32> to vector<8x128xf32>
    %183 = arith.negf %182 : vector<8x128xf32>
    %184 = math.exp %183 : vector<8x128xf32>
    %cst_88 = arith.constant 1.000000e+00 : f32
    %185 = vector.broadcast %cst_88 : f32 to vector<8x128xf32>
    %186 = arith.addf %185, %184 : vector<8x128xf32>
    %187 = arith.divf %185, %186 : vector<8x128xf32>
    %188 = vector.extract_strided_slice %175 {offsets = [0, 256], sizes = [8, 128], strides = [1, 1]} : vector<8x512xf32> to vector<8x128xf32>
    %189 = math.tanh %188 : vector<8x128xf32>
    %190 = vector.extract_strided_slice %175 {offsets = [0, 384], sizes = [8, 128], strides = [1, 1]} : vector<8x512xf32> to vector<8x128xf32>
    %191 = arith.negf %190 : vector<8x128xf32>
    %192 = math.exp %191 : vector<8x128xf32>
    %cst_89 = arith.constant 1.000000e+00 : f32
    %193 = vector.broadcast %cst_89 : f32 to vector<8x128xf32>
    %194 = arith.addf %193, %192 : vector<8x128xf32>
    %195 = arith.divf %193, %194 : vector<8x128xf32>
    %c0_90 = arith.constant 0 : index
    %c0_91 = arith.constant 0 : index
    %196 = vector.load %arg7[%c0_90, %c0_91] : memref<8x128xf32, #tpu.memory_space<vmem>>, vector<8x128xf32>
    %197 = arith.mulf %187, %196 : vector<8x128xf32>
    %198 = arith.mulf %181, %189 : vector<8x128xf32>
    %199 = arith.addf %197, %198 : vector<8x128xf32>
    %200 = math.tanh %199 : vector<8x128xf32>
    %201 = arith.mulf %195, %200 : vector<8x128xf32>
    %c0_92 = arith.constant 0 : index
    %c0_93 = arith.constant 0 : index
    %202 = vector.load %arg7[%c0_92, %c0_93] : memref<8x128xf32, #tpu.memory_space<vmem>>, vector<8x128xf32>
    tpu.vector_store %arg7[%c0_92, %c0_93], %199 {strides = array<i32>} : memref<8x128xf32, #tpu.memory_space<vmem>>, vector<8x128xf32>,
    %c0_94 = arith.constant 0 : index
    %c0_95 = arith.constant 0 : index
    %203 = vector.load %arg6[%c0_94, %c0_95] : memref<8x128xf32, #tpu.memory_space<vmem>>, vector<8x128xf32>
    tpu.vector_store %arg6[%c0_94, %c0_95], %201 {strides = array<i32>} : memref<8x128xf32, #tpu.memory_space<vmem>>, vector<8x128xf32>,
    %204 = arith.index_cast %168 : i32 to index
    %c0_96 = arith.constant 0 : index
    %205 = vector.load %arg4[%204, %c0_96] : memref<64x128xf32, #tpu.memory_space<vmem>>, vector<8x128xf32>
    tpu.vector_store %arg4[%204, %c0_96], %201 {strides = array<i32>} : memref<64x128xf32, #tpu.memory_space<vmem>>, vector<8x128xf32>,
    %c5_i32 = arith.constant 5 : i32
    %c8_i32_97 = arith.constant 8 : i32
    %206 = arith.muli %c5_i32, %c8_i32_97 : i32
    %207 = tpu.assume_multiple %206, 8 : i32
    %208 = arith.index_cast %207 : i32 to index
    %c0_98 = arith.constant 0 : index
    %209 = vector.load %arg5[%208, %c0_98] : memref<64x512xf32, #tpu.memory_space<vmem>>, vector<8x512xf32>
    %c0_99 = arith.constant 0 : index
    %c0_100 = arith.constant 0 : index
    %210 = vector.load %arg6[%c0_99, %c0_100] : memref<8x128xf32, #tpu.memory_space<vmem>>, vector<8x128xf32>
    %211 = arith.truncf %210 : vector<8x128xf32> to vector<8x128xbf16>
    %c0_101 = arith.constant 0 : index
    %c0_102 = arith.constant 0 : index
    %212 = vector.load %arg2[%c0_101, %c0_102] : memref<128x512xbf16, #tpu.memory_space<vmem>>, vector<128x512xbf16>
    %cst_103 = arith.constant dense<0.000000e+00> : vector<8x512xf32>
    %213 = tpu.matmul %211, %212, %cst_103 {dimension_numbers = #tpu.dot_dimension_numbers<[1], [0], [0], [1], [0, 0, 1, 1], [], []>} : vector<8x128xbf16>, vector<128x512xbf16>, vector<8x512xf32> -> vector<8x512xf32>
    %214 = arith.addf %209, %213 : vector<8x512xf32>
    %215 = vector.extract_strided_slice %214 {offsets = [0, 0], sizes = [8, 128], strides = [1, 1]} : vector<8x512xf32> to vector<8x128xf32>
    %216 = arith.negf %215 : vector<8x128xf32>
    %217 = math.exp %216 : vector<8x128xf32>
    %cst_104 = arith.constant 1.000000e+00 : f32
    %218 = vector.broadcast %cst_104 : f32 to vector<8x128xf32>
    %219 = arith.addf %218, %217 : vector<8x128xf32>
    %220 = arith.divf %218, %219 : vector<8x128xf32>
    %221 = vector.extract_strided_slice %214 {offsets = [0, 128], sizes = [8, 128], strides = [1, 1]} : vector<8x512xf32> to vector<8x128xf32>
    %222 = arith.negf %221 : vector<8x128xf32>
    %223 = math.exp %222 : vector<8x128xf32>
    %cst_105 = arith.constant 1.000000e+00 : f32
    %224 = vector.broadcast %cst_105 : f32 to vector<8x128xf32>
    %225 = arith.addf %224, %223 : vector<8x128xf32>
    %226 = arith.divf %224, %225 : vector<8x128xf32>
    %227 = vector.extract_strided_slice %214 {offsets = [0, 256], sizes = [8, 128], strides = [1, 1]} : vector<8x512xf32> to vector<8x128xf32>
    %228 = math.tanh %227 : vector<8x128xf32>
    %229 = vector.extract_strided_slice %214 {offsets = [0, 384], sizes = [8, 128], strides = [1, 1]} : vector<8x512xf32> to vector<8x128xf32>
    %230 = arith.negf %229 : vector<8x128xf32>
    %231 = math.exp %230 : vector<8x128xf32>
    %cst_106 = arith.constant 1.000000e+00 : f32
    %232 = vector.broadcast %cst_106 : f32 to vector<8x128xf32>
    %233 = arith.addf %232, %231 : vector<8x128xf32>
    %234 = arith.divf %232, %233 : vector<8x128xf32>
    %c0_107 = arith.constant 0 : index
    %c0_108 = arith.constant 0 : index
    %235 = vector.load %arg7[%c0_107, %c0_108] : memref<8x128xf32, #tpu.memory_space<vmem>>, vector<8x128xf32>
    %236 = arith.mulf %226, %235 : vector<8x128xf32>
    %237 = arith.mulf %220, %228 : vector<8x128xf32>
    %238 = arith.addf %236, %237 : vector<8x128xf32>
    %239 = math.tanh %238 : vector<8x128xf32>
    %240 = arith.mulf %234, %239 : vector<8x128xf32>
    %c0_109 = arith.constant 0 : index
    %c0_110 = arith.constant 0 : index
    %241 = vector.load %arg7[%c0_109, %c0_110] : memref<8x128xf32, #tpu.memory_space<vmem>>, vector<8x128xf32>
    tpu.vector_store %arg7[%c0_109, %c0_110], %238 {strides = array<i32>} : memref<8x128xf32, #tpu.memory_space<vmem>>, vector<8x128xf32>,
    %c0_111 = arith.constant 0 : index
    %c0_112 = arith.constant 0 : index
    %242 = vector.load %arg6[%c0_111, %c0_112] : memref<8x128xf32, #tpu.memory_space<vmem>>, vector<8x128xf32>
    tpu.vector_store %arg6[%c0_111, %c0_112], %240 {strides = array<i32>} : memref<8x128xf32, #tpu.memory_space<vmem>>, vector<8x128xf32>,
    %243 = arith.index_cast %207 : i32 to index
    %c0_113 = arith.constant 0 : index
    %244 = vector.load %arg4[%243, %c0_113] : memref<64x128xf32, #tpu.memory_space<vmem>>, vector<8x128xf32>
    tpu.vector_store %arg4[%243, %c0_113], %240 {strides = array<i32>} : memref<64x128xf32, #tpu.memory_space<vmem>>, vector<8x128xf32>,
    %c6_i32 = arith.constant 6 : i32
    %c8_i32_114 = arith.constant 8 : i32
    %245 = arith.muli %c6_i32, %c8_i32_114 : i32
    %246 = tpu.assume_multiple %245, 8 : i32
    %247 = arith.index_cast %246 : i32 to index
    %c0_115 = arith.constant 0 : index
    %248 = vector.load %arg5[%247, %c0_115] : memref<64x512xf32, #tpu.memory_space<vmem>>, vector<8x512xf32>
    %c0_116 = arith.constant 0 : index
    %c0_117 = arith.constant 0 : index
    %249 = vector.load %arg6[%c0_116, %c0_117] : memref<8x128xf32, #tpu.memory_space<vmem>>, vector<8x128xf32>
    %250 = arith.truncf %249 : vector<8x128xf32> to vector<8x128xbf16>
    %c0_118 = arith.constant 0 : index
    %c0_119 = arith.constant 0 : index
    %251 = vector.load %arg2[%c0_118, %c0_119] : memref<128x512xbf16, #tpu.memory_space<vmem>>, vector<128x512xbf16>
    %cst_120 = arith.constant dense<0.000000e+00> : vector<8x512xf32>
    %252 = tpu.matmul %250, %251, %cst_120 {dimension_numbers = #tpu.dot_dimension_numbers<[1], [0], [0], [1], [0, 0, 1, 1], [], []>} : vector<8x128xbf16>, vector<128x512xbf16>, vector<8x512xf32> -> vector<8x512xf32>
    %253 = arith.addf %248, %252 : vector<8x512xf32>
    %254 = vector.extract_strided_slice %253 {offsets = [0, 0], sizes = [8, 128], strides = [1, 1]} : vector<8x512xf32> to vector<8x128xf32>
    %255 = arith.negf %254 : vector<8x128xf32>
    %256 = math.exp %255 : vector<8x128xf32>
    %cst_121 = arith.constant 1.000000e+00 : f32
    %257 = vector.broadcast %cst_121 : f32 to vector<8x128xf32>
    %258 = arith.addf %257, %256 : vector<8x128xf32>
    %259 = arith.divf %257, %258 : vector<8x128xf32>
    %260 = vector.extract_strided_slice %253 {offsets = [0, 128], sizes = [8, 128], strides = [1, 1]} : vector<8x512xf32> to vector<8x128xf32>
    %261 = arith.negf %260 : vector<8x128xf32>
    %262 = math.exp %261 : vector<8x128xf32>
    %cst_122 = arith.constant 1.000000e+00 : f32
    %263 = vector.broadcast %cst_122 : f32 to vector<8x128xf32>
    %264 = arith.addf %263, %262 : vector<8x128xf32>
    %265 = arith.divf %263, %264 : vector<8x128xf32>
    %266 = vector.extract_strided_slice %253 {offsets = [0, 256], sizes = [8, 128], strides = [1, 1]} : vector<8x512xf32> to vector<8x128xf32>
    %267 = math.tanh %266 : vector<8x128xf32>
    %268 = vector.extract_strided_slice %253 {offsets = [0, 384], sizes = [8, 128], strides = [1, 1]} : vector<8x512xf32> to vector<8x128xf32>
    %269 = arith.negf %268 : vector<8x128xf32>
    %270 = math.exp %269 : vector<8x128xf32>
    %cst_123 = arith.constant 1.000000e+00 : f32
    %271 = vector.broadcast %cst_123 : f32 to vector<8x128xf32>
    %272 = arith.addf %271, %270 : vector<8x128xf32>
    %273 = arith.divf %271, %272 : vector<8x128xf32>
    %c0_124 = arith.constant 0 : index
    %c0_125 = arith.constant 0 : index
    %274 = vector.load %arg7[%c0_124, %c0_125] : memref<8x128xf32, #tpu.memory_space<vmem>>, vector<8x128xf32>
    %275 = arith.mulf %265, %274 : vector<8x128xf32>
    %276 = arith.mulf %259, %267 : vector<8x128xf32>
    %277 = arith.addf %275, %276 : vector<8x128xf32>
    %278 = math.tanh %277 : vector<8x128xf32>
    %279 = arith.mulf %273, %278 : vector<8x128xf32>
    %c0_126 = arith.constant 0 : index
    %c0_127 = arith.constant 0 : index
    %280 = vector.load %arg7[%c0_126, %c0_127] : memref<8x128xf32, #tpu.memory_space<vmem>>, vector<8x128xf32>
    tpu.vector_store %arg7[%c0_126, %c0_127], %277 {strides = array<i32>} : memref<8x128xf32, #tpu.memory_space<vmem>>, vector<8x128xf32>,
    %c0_128 = arith.constant 0 : index
    %c0_129 = arith.constant 0 : index
    %281 = vector.load %arg6[%c0_128, %c0_129] : memref<8x128xf32, #tpu.memory_space<vmem>>, vector<8x128xf32>
    tpu.vector_store %arg6[%c0_128, %c0_129], %279 {strides = array<i32>} : memref<8x128xf32, #tpu.memory_space<vmem>>, vector<8x128xf32>,
    %282 = arith.index_cast %246 : i32 to index
    %c0_130 = arith.constant 0 : index
    %283 = vector.load %arg4[%282, %c0_130] : memref<64x128xf32, #tpu.memory_space<vmem>>, vector<8x128xf32>
    tpu.vector_store %arg4[%282, %c0_130], %279 {strides = array<i32>} : memref<64x128xf32, #tpu.memory_space<vmem>>, vector<8x128xf32>,
    %c7_i32 = arith.constant 7 : i32
    %c8_i32_131 = arith.constant 8 : i32
    %284 = arith.muli %c7_i32, %c8_i32_131 : i32
    %285 = tpu.assume_multiple %284, 8 : i32
    %286 = arith.index_cast %285 : i32 to index
    %c0_132 = arith.constant 0 : index
    %287 = vector.load %arg5[%286, %c0_132] : memref<64x512xf32, #tpu.memory_space<vmem>>, vector<8x512xf32>
    %c0_133 = arith.constant 0 : index
    %c0_134 = arith.constant 0 : index
    %288 = vector.load %arg6[%c0_133, %c0_134] : memref<8x128xf32, #tpu.memory_space<vmem>>, vector<8x128xf32>
    %289 = arith.truncf %288 : vector<8x128xf32> to vector<8x128xbf16>
    %c0_135 = arith.constant 0 : index
    %c0_136 = arith.constant 0 : index
    %290 = vector.load %arg2[%c0_135, %c0_136] : memref<128x512xbf16, #tpu.memory_space<vmem>>, vector<128x512xbf16>
    %cst_137 = arith.constant dense<0.000000e+00> : vector<8x512xf32>
    %291 = tpu.matmul %289, %290, %cst_137 {dimension_numbers = #tpu.dot_dimension_numbers<[1], [0], [0], [1], [0, 0, 1, 1], [], []>} : vector<8x128xbf16>, vector<128x512xbf16>, vector<8x512xf32> -> vector<8x512xf32>
    %292 = arith.addf %287, %291 : vector<8x512xf32>
    %293 = vector.extract_strided_slice %292 {offsets = [0, 0], sizes = [8, 128], strides = [1, 1]} : vector<8x512xf32> to vector<8x128xf32>
    %294 = arith.negf %293 : vector<8x128xf32>
    %295 = math.exp %294 : vector<8x128xf32>
    %cst_138 = arith.constant 1.000000e+00 : f32
    %296 = vector.broadcast %cst_138 : f32 to vector<8x128xf32>
    %297 = arith.addf %296, %295 : vector<8x128xf32>
    %298 = arith.divf %296, %297 : vector<8x128xf32>
    %299 = vector.extract_strided_slice %292 {offsets = [0, 128], sizes = [8, 128], strides = [1, 1]} : vector<8x512xf32> to vector<8x128xf32>
    %300 = arith.negf %299 : vector<8x128xf32>
    %301 = math.exp %300 : vector<8x128xf32>
    %cst_139 = arith.constant 1.000000e+00 : f32
    %302 = vector.broadcast %cst_139 : f32 to vector<8x128xf32>
    %303 = arith.addf %302, %301 : vector<8x128xf32>
    %304 = arith.divf %302, %303 : vector<8x128xf32>
    %305 = vector.extract_strided_slice %292 {offsets = [0, 256], sizes = [8, 128], strides = [1, 1]} : vector<8x512xf32> to vector<8x128xf32>
    %306 = math.tanh %305 : vector<8x128xf32>
    %307 = vector.extract_strided_slice %292 {offsets = [0, 384], sizes = [8, 128], strides = [1, 1]} : vector<8x512xf32> to vector<8x128xf32>
    %308 = arith.negf %307 : vector<8x128xf32>
    %309 = math.exp %308 : vector<8x128xf32>
    %cst_140 = arith.constant 1.000000e+00 : f32
    %310 = vector.broadcast %cst_140 : f32 to vector<8x128xf32>
    %311 = arith.addf %310, %309 : vector<8x128xf32>
    %312 = arith.divf %310, %311 : vector<8x128xf32>
    %c0_141 = arith.constant 0 : index
    %c0_142 = arith.constant 0 : index
    %313 = vector.load %arg7[%c0_141, %c0_142] : memref<8x128xf32, #tpu.memory_space<vmem>>, vector<8x128xf32>
    %314 = arith.mulf %304, %313 : vector<8x128xf32>
    %315 = arith.mulf %298, %306 : vector<8x128xf32>
    %316 = arith.addf %314, %315 : vector<8x128xf32>
    %317 = math.tanh %316 : vector<8x128xf32>
    %318 = arith.mulf %312, %317 : vector<8x128xf32>
    %c0_143 = arith.constant 0 : index
    %c0_144 = arith.constant 0 : index
    %319 = vector.load %arg7[%c0_143, %c0_144] : memref<8x128xf32, #tpu.memory_space<vmem>>, vector<8x128xf32>
    tpu.vector_store %arg7[%c0_143, %c0_144], %316 {strides = array<i32>} : memref<8x128xf32, #tpu.memory_space<vmem>>, vector<8x128xf32>,
    %c0_145 = arith.constant 0 : index
    %c0_146 = arith.constant 0 : index
    %320 = vector.load %arg6[%c0_145, %c0_146] : memref<8x128xf32, #tpu.memory_space<vmem>>, vector<8x128xf32>
    tpu.vector_store %arg6[%c0_145, %c0_146], %318 {strides = array<i32>} : memref<8x128xf32, #tpu.memory_space<vmem>>, vector<8x128xf32>,
    %321 = arith.index_cast %285 : i32 to index
    %c0_147 = arith.constant 0 : index
    %322 = vector.load %arg4[%321, %c0_147] : memref<64x128xf32, #tpu.memory_space<vmem>>, vector<8x128xf32>
    tpu.vector_store %arg4[%321, %c0_147], %318 {strides = array<i32>} : memref<64x128xf32, #tpu.memory_space<vmem>>, vector<8x128xf32>,
    %c8_i32_148 = arith.constant 8 : i32
    return
  }
}

module attributes {stable_mosaic.version = 11 : i64} {
  func.func @proj_ce_kernel(%arg0: i32, %arg1: memref<64x128xf32, #tpu.memory_space<vmem>>, %arg2: memref<128x128xbf16, #tpu.memory_space<vmem>>, %arg3: memref<1x128xf32, #tpu.memory_space<vmem>>, %arg4: memref<64x1xi32, #tpu.memory_space<vmem>>, %arg5: memref<64x1xf32, #tpu.memory_space<vmem>>, %arg6: memref<1x1xf32, #tpu.memory_space<vmem>>, %arg7: memref<1x1xf32, #tpu.memory_space<vmem>>, %arg8: memref<1x1xf32, #tpu.memory_space<vmem>>) attributes {dimension_semantics = [#tpu.dimension_semantics<arbitrary>], iteration_bounds = array<i64: 1>, scalar_prefetch = 0 : i64, scratch_operands = 2 : i64, tpu.core_type = #tpu.core_type<tc>, window_params = [{transform_indices = @transform_0, window_bounds = array<i64: 64, 128>}, {pipeline_mode = #tpu.pipeline_mode<synchronous>, transform_indices = @transform_1, window_bounds = array<i64: 128, 128>}, {pipeline_mode = #tpu.pipeline_mode<synchronous>, transform_indices = @transform_2, window_bounds = array<i64: 1, 128>}, {transform_indices = @transform_3, window_bounds = array<i64: 64, 1>}, {transform_indices = @transform_4, window_bounds = array<i64: 64, 1>}, {pipeline_mode = #tpu.pipeline_mode<synchronous>, transform_indices = @transform_5, window_bounds = array<i64: 1, 1>}]} {
    %c0_i32 = arith.constant 0 : i32
    %0 = arith.cmpi eq, %arg0, %c0_i32 : i32
    %1 = arith.extui %0 : i1 to i32
    %c0_i32_0 = arith.constant 0 : i32
    %2 = arith.cmpi ne, %1, %c0_i32_0 : i32
    scf.if %2 {
      %cst_26 = arith.constant 0.000000e+00 : f32
      %44 = vector.broadcast %cst_26 : f32 to vector<1x1xf32>
      %c0_27 = arith.constant 0 : index
      %c0_28 = arith.constant 0 : index
      %45 = vector.load %arg7[%c0_27, %c0_28] : memref<1x1xf32, #tpu.memory_space<vmem>>, vector<1x1xf32>
      tpu.vector_store %arg7[%c0_27, %c0_28], %44 {strides = array<i32>} : memref<1x1xf32, #tpu.memory_space<vmem>>, vector<1x1xf32>,
      %cst_29 = arith.constant 0.000000e+00 : f32
      %46 = vector.broadcast %cst_29 : f32 to vector<1x1xf32>
      %c0_30 = arith.constant 0 : index
      %c0_31 = arith.constant 0 : index
      %47 = vector.load %arg8[%c0_30, %c0_31] : memref<1x1xf32, #tpu.memory_space<vmem>>, vector<1x1xf32>
      tpu.vector_store %arg8[%c0_30, %c0_31], %46 {strides = array<i32>} : memref<1x1xf32, #tpu.memory_space<vmem>>, vector<1x1xf32>,
    } else {
    }
    %c0 = arith.constant 0 : index
    %c0_1 = arith.constant 0 : index
    %3 = vector.load %arg1[%c0, %c0_1] : memref<64x128xf32, #tpu.memory_space<vmem>>, vector<64x128xf32>
    %4 = math.tanh %3 : vector<64x128xf32>
    %5 = arith.truncf %4 : vector<64x128xf32> to vector<64x128xbf16>
    %c0_2 = arith.constant 0 : index
    %c0_3 = arith.constant 0 : index
    %6 = vector.load %arg2[%c0_2, %c0_3] : memref<128x128xbf16, #tpu.memory_space<vmem>>, vector<128x128xbf16>
    %cst = arith.constant dense<0.000000e+00> : vector<64x128xf32>
    %7 = tpu.matmul %5, %6, %cst {dimension_numbers = #tpu.dot_dimension_numbers<[1], [0], [0], [1], [0, 0, 1, 1], [], []>} : vector<64x128xbf16>, vector<128x128xbf16>, vector<64x128xf32> -> vector<64x128xf32>
    %c0_4 = arith.constant 0 : index
    %c0_5 = arith.constant 0 : index
    %8 = vector.load %arg3[%c0_4, %c0_5] : memref<1x128xf32, #tpu.memory_space<vmem>>, vector<1x128xf32>
    %9 = vector.broadcast %8 : vector<1x128xf32> to vector<64x128xf32>
    %10 = arith.addf %7, %9 : vector<64x128xf32>
    %cst_6 = arith.constant dense<0xFF800000> : vector<64xf32>
    %11 = vector.multi_reduction <maximumf>, %10, %cst_6 [1] : vector<64x128xf32> to vector<64xf32>
    %12 = vector.shape_cast %11 : vector<64xf32> to vector<64x1xf32>
    %13 = vector.broadcast %12 : vector<64x1xf32> to vector<64x128xf32>
    %14 = arith.subf %10, %13 : vector<64x128xf32>
    %15 = math.exp %14 : vector<64x128xf32>
    %cst_7 = arith.constant dense<0.000000e+00> : vector<64xf32>
    %16 = vector.multi_reduction <add>, %15, %cst_7 [1] : vector<64x128xf32> to vector<64xf32>
    %17 = vector.shape_cast %16 : vector<64xf32> to vector<64x1xf32>
    %18 = math.log %17 : vector<64x1xf32>
    %19 = arith.addf %12, %18 : vector<64x1xf32>
    %20 = tpu.iota {dimensions = array<i32: 1>} : vector<64x128xi32>
    %c0_8 = arith.constant 0 : index
    %c0_9 = arith.constant 0 : index
    %21 = vector.load %arg4[%c0_8, %c0_9] : memref<64x1xi32, #tpu.memory_space<vmem>>, vector<64x1xi32>
    %22 = vector.broadcast %21 : vector<64x1xi32> to vector<64x128xi32>
    %23 = arith.cmpi eq, %20, %22 : vector<64x128xi32>
    %cst_10 = arith.constant 0.000000e+00 : f32
    %24 = vector.broadcast %cst_10 : f32 to vector<64x128xf32>
    %25 = arith.select %23, %10, %24 : vector<64x128xi1>, vector<64x128xf32>
    %cst_11 = arith.constant dense<0.000000e+00> : vector<64xf32>
    %26 = vector.multi_reduction <add>, %25, %cst_11 [1] : vector<64x128xf32> to vector<64xf32>
    %27 = vector.shape_cast %26 : vector<64xf32> to vector<64x1xf32>
    %c0_12 = arith.constant 0 : index
    %c0_13 = arith.constant 0 : index
    %28 = vector.load %arg5[%c0_12, %c0_13] : memref<64x1xf32, #tpu.memory_space<vmem>>, vector<64x1xf32>
    %29 = arith.subf %19, %27 : vector<64x1xf32>
    %30 = arith.mulf %29, %28 : vector<64x1xf32>
    %c0_14 = arith.constant 0 : index
    %c0_15 = arith.constant 0 : index
    %31 = vector.load %arg7[%c0_14, %c0_15] : memref<1x1xf32, #tpu.memory_space<vmem>>, vector<1x1xf32>
    %cst_16 = arith.constant dense<0.000000e+00> : vector<1xf32>
    %32 = vector.multi_reduction <add>, %30, %cst_16 [0] : vector<64x1xf32> to vector<1xf32>
    %33 = vector.shape_cast %32 : vector<1xf32> to vector<1x1xf32>
    %34 = arith.addf %31, %33 : vector<1x1xf32>
    %c0_17 = arith.constant 0 : index
    %c0_18 = arith.constant 0 : index
    %35 = vector.load %arg7[%c0_17, %c0_18] : memref<1x1xf32, #tpu.memory_space<vmem>>, vector<1x1xf32>
    tpu.vector_store %arg7[%c0_17, %c0_18], %34 {strides = array<i32>} : memref<1x1xf32, #tpu.memory_space<vmem>>, vector<1x1xf32>,
    %c0_19 = arith.constant 0 : index
    %c0_20 = arith.constant 0 : index
    %36 = vector.load %arg8[%c0_19, %c0_20] : memref<1x1xf32, #tpu.memory_space<vmem>>, vector<1x1xf32>
    %cst_21 = arith.constant dense<0.000000e+00> : vector<1xf32>
    %37 = vector.multi_reduction <add>, %28, %cst_21 [0] : vector<64x1xf32> to vector<1xf32>
    %38 = vector.shape_cast %37 : vector<1xf32> to vector<1x1xf32>
    %39 = arith.addf %36, %38 : vector<1x1xf32>
    %c0_22 = arith.constant 0 : index
    %c0_23 = arith.constant 0 : index
    %40 = vector.load %arg8[%c0_22, %c0_23] : memref<1x1xf32, #tpu.memory_space<vmem>>, vector<1x1xf32>
    tpu.vector_store %arg8[%c0_22, %c0_23], %39 {strides = array<i32>} : memref<1x1xf32, #tpu.memory_space<vmem>>, vector<1x1xf32>,
    %c0_i32_24 = arith.constant 0 : i32
    %41 = arith.cmpi eq, %arg0, %c0_i32_24 : i32
    %42 = arith.extui %41 : i1 to i32
    %c0_i32_25 = arith.constant 0 : i32
    %43 = arith.cmpi ne, %42, %c0_i32_25 : i32
    scf.if %43 {
      %c0_26 = arith.constant 0 : index
      %c0_27 = arith.constant 0 : index
      %44 = vector.load %arg7[%c0_26, %c0_27] : memref<1x1xf32, #tpu.memory_space<vmem>>, vector<1x1xf32>
      %c0_28 = arith.constant 0 : index
      %c0_29 = arith.constant 0 : index
      %45 = vector.load %arg8[%c0_28, %c0_29] : memref<1x1xf32, #tpu.memory_space<vmem>>, vector<1x1xf32>
      %cst_30 = arith.constant 1.000000e+00 : f32
      %46 = vector.broadcast %cst_30 : f32 to vector<1x1xf32>
      %47 = arith.maximumf %45, %46 : vector<1x1xf32>
      %48 = arith.divf %44, %47 : vector<1x1xf32>
      %c0_31 = arith.constant 0 : index
      %c0_32 = arith.constant 0 : index
      %49 = vector.load %arg6[%c0_31, %c0_32] : memref<1x1xf32, #tpu.memory_space<vmem>>, vector<1x1xf32>
      tpu.vector_store %arg6[%c0_31, %c0_32], %48 {strides = array<i32>} : memref<1x1xf32, #tpu.memory_space<vmem>>, vector<1x1xf32>,
    } else {
    }
    return
  }
  func.func @transform_0(%arg0: i32) -> (i32, i32) {
    %c0_i32 = arith.constant 0 : i32
    %c0_i32_0 = arith.constant 0 : i32
    return %arg0, %c0_i32 : i32, i32
  }
  func.func @transform_1(%arg0: i32) -> (i32, i32) {
    %c0_i32 = arith.constant 0 : i32
    %c0_i32_0 = arith.constant 0 : i32
    %c0_i32_1 = arith.constant 0 : i32
    return %c0_i32, %c0_i32_0 : i32, i32
  }
  func.func @transform_2(%arg0: i32) -> (i32, i32) {
    %c0_i32 = arith.constant 0 : i32
    %c0_i32_0 = arith.constant 0 : i32
    %c0_i32_1 = arith.constant 0 : i32
    return %c0_i32, %c0_i32_0 : i32, i32
  }
  func.func @transform_3(%arg0: i32) -> (i32, i32) {
    %c0_i32 = arith.constant 0 : i32
    %c0_i32_0 = arith.constant 0 : i32
    return %arg0, %c0_i32 : i32, i32
  }
  func.func @transform_4(%arg0: i32) -> (i32, i32) {
    %c0_i32 = arith.constant 0 : i32
    %c0_i32_0 = arith.constant 0 : i32
    return %arg0, %c0_i32 : i32, i32
  }
  func.func @transform_5(%arg0: i32) -> (i32, i32) {
    %c0_i32 = arith.constant 0 : i32
    %c0_i32_0 = arith.constant 0 : i32
    %c0_i32_1 = arith.constant 0 : i32
    return %c0_i32, %c0_i32_0 : i32, i32
  }
}

</mosaic_0001>

<bundles_post_ra>
// kernel: lm_forward.3
= control target key start
LH: loop header
LB: loop body
LE: loop exit
PB: predicated region body
PF: predicated region fallthrough
CT: control target
= control target key end

     0   :  { %s845_s0 = inlined_call_operand.vmem [shape: f32[64,128], index: 0, kind: input, shape index: {}]   ;;  %s846_s1 = inlined_call_operand.vmem [shape: bf16[128,128], index: 1, kind: input, shape index: {}]   ;;  %s847_s2 = inlined_call_operand.vmem [shape: f32[1,128], index: 2, kind: input, shape index: {}]   ;;  %s848_s3 = inlined_call_operand.vmem [shape: s32[64,1], index: 3, kind: input, shape index: {}]   ;;  %s849_s4 = inlined_call_operand.vmem [shape: f32[64,1], index: 4, kind: input, shape index: {}]   ;;  %s850_s5 = inlined_call_operand.hbm [shape: f32[1,1], index: 5, kind: output, shape index: {}]  }
   0x1   :  { %v494_v0 = vld [vmem:[%s846_s1] sm:$0xff]   ;;  %v495_v1 = vld [vmem:[%s846_s1 + $0x8] sm:$0xff]   ;;  %v496_v2 = vld [vmem:[%s846_s1 + $0x10] sm:$0xff]  }
   0x2   :  { %449 = vmatprep.subr.bf16.mxu0 %v494_v0  ;;  %473 = vmatprep.subr.bf16.mxu1 %v494_v0  ;;  %v497_v3 = vld [vmem:[%s846_s1 + $0x18] sm:$0xff]   ;;  %v29_v4 = vld [vmem:[%s845_s0] sm:$0xff]  ;;  %v30_v5 = vld [vmem:[%s845_s0 + $0x8] sm:$0xff] }
   0x3   :  { %450 = vmatpush3.bf16.msra.mxu0 %v494_v0  ;;  %481 = vmatpush3.bf16.msra.mxu1 %v494_v0  ;;  %502 = vtanh.f32 %v29_v4  ;;  %v31_v6 = vld [vmem:[%s845_s0 + $0x10] sm:$0xff]  ;;  %v33_v7 = vld [vmem:[%s845_s0 + $0x20] sm:$0xff] }
   0x4   :  { %451 = vmatprep.subr.bf16.mxu0 %v495_v1  ;;  %474 = vmatprep.subr.bf16.mxu1 %v495_v1  ;;  %504 = vtanh.f32 %v30_v5 }
   0x7   :  { %452 = vmatpush3.bf16.msra.mxu0 %v495_v1  ;;  %482 = vmatpush3.bf16.msra.mxu1 %v495_v1 }
   0x8   :  { %453 = vmatprep.subr.bf16.mxu0 %v496_v2  ;;  %475 = vmatprep.subr.bf16.mxu1 %v496_v2 }
   0x9   :  { %10 = vsyncpa [#allocation5], 0  ;;  %v34_v8 = vld [vmem:[%s845_s0 + $0x28] sm:$0xff]  ;;  %v498_v9 = vld [vmem:[%s846_s1 + $0x20] sm:$0xff]   ;;  %506 = vtanh.f32 %v31_v6  ;;  %v576_v28 = vmov 0   ;;  %vm356_vm6 = vcmask 7168  }
   0xa   :  { %v32_v10 = vld [vmem:[%s845_s0 + $0x18] sm:$0xff]  ;;  %508 = vtanh.f32 %v33_v7  ;;  %v35_v11 = vld [vmem:[%s845_s0 + $0x30] sm:$0xff]  ;;  %v499_v13 = vld [vmem:[%s846_s1 + $0x28] sm:$0xff]   ;;  %493 = vset.pattern.permute.xlu1 %v576_v28  ;;  %492 = vset.pattern.permute.xlu0 %v576_v28  ;;  %vm26_vm9 = vcmask 0  }
   0xb   :  { %454 = vmatpush3.bf16.msra.mxu0 %v496_v2  ;;  %483 = vmatpush3.bf16.msra.mxu1 %v496_v2  ;;  %510 = vtanh.f32 %v34_v8  ;;  %v36_v12 = vld [vmem:[%s845_s0 + $0x38] sm:$0xff]  ;;  %v500_v16 = vld [vmem:[%s846_s1 + $0x30] sm:$0xff]   ;;  %v428_v29 = vld [vmem:[%s847_s2] ss:$0 sm:$0xff] }
   0xc   :  { %455 = vmatprep.subr.bf16.mxu0 %v497_v3  ;;  %476 = vmatprep.subr.bf16.mxu1 %v497_v3  ;;  %512 = vtanh.f32 %v32_v10  ;;  %v501_v21 = vld [vmem:[%s846_s1 + $0x38] sm:$0xff]   ;;  %v268_v46 = vld [vmem:[%s848_s3 + $0x8] sm:$0xff]  ;;  %v269_v47 = vld [vmem:[%s848_s3 + $0x10] sm:$0xff] }
   0xd   :  { %514 = vtanh.f32 %v35_v11  ;;  %v503_v14 = vpop.eup %502  ;;  %v270_v48 = vld [vmem:[%s848_s3 + $0x18] sm:$0xff]  ;;  %v267_v49 = vld [vmem:[%s848_s3] sm:$0xff]  ;;  %v272_v51 = vld [vmem:[%s848_s3 + $0x28] sm:$0xff] }
   0xe   :  { %516 = vtanh.f32 %v36_v12  ;;  %v505_v15 = vpop.eup %504  ;;  %v271_v50 = vld [vmem:[%s848_s3 + $0x20] sm:$0xff]  ;;  %v273_v52 = vld [vmem:[%s848_s3 + $0x30] sm:$0xff]  ;;  %v274_v53 = vld [vmem:[%s848_s3 + $0x38] sm:$0xff] }
   0xf   :  { %456 = vmatpush3.bf16.msra.mxu0 %v497_v3  ;;  %484 = vmatpush3.bf16.msra.mxu1 %v497_v3  ;;  %v45_v17 = vpack.c.bf16 %v505_v15, %v503_v14  ;;  %v265_v15 = vlaneseq }
  0x10   :  { %457 = vmatprep.subr.bf16.mxu0 %v498_v9  ;;  %477 = vmatprep.subr.bf16.mxu1 %v498_v9 }
  0x11   :  { %465 = vmatprep.mubr.bf16.mxu0 %v45_v17 }
  0x13   :  { %458 = vmatpush3.bf16.msra.mxu0 %v498_v9  ;;  %485 = vmatpush3.bf16.msra.mxu1 %v498_v9  ;;  %v507_v18 = vpop.eup %506 }
  0x14   :  { %459 = vmatprep.subr.bf16.mxu0 %v499_v13  ;;  %478 = vmatprep.subr.bf16.mxu1 %v499_v13  ;;  %v509_v19 = vpop.eup %508 }
  0x15   :  { %v511_v20 = vpop.eup %510 }
  0x16   :  { %v513_v22 = vpop.eup %512  ;;  %v47_v23 = vpack.c.bf16 %v511_v20, %v509_v19 }
  0x17   :  { %460 = vmatpush3.bf16.msra.mxu0 %v499_v13  ;;  %486 = vmatpush3.bf16.msra.mxu1 %v499_v13  ;;  %v515_v24 = vpop.eup %514  ;;  %v46_v26 = vpack.c.bf16 %v513_v22, %v507_v18  ;;  %v266_v18 = vand.u32 127, %v265_v15 }
  0x18   :  { %461 = vmatprep.subr.bf16.mxu0 %v500_v16  ;;  %479 = vmatprep.subr.bf16.mxu1 %v500_v16  ;;  %v517_v25 = vpop.eup %516 }
  0x19   :  { %469 = vmatprep.mubr.bf16.mxu1 %v47_v23  ;;  %v48_v27 = vpack.c.bf16 %v517_v25, %v515_v24 }
  0x1b   :  { %462 = vmatpush3.bf16.msra.mxu0 %v500_v16  ;;  %487 = vmatpush3.bf16.msra.mxu1 %v500_v16 }
  0x1c   :  { %463 = vmatprep.subr.bf16.mxu0 %v501_v21  ;;  %480 = vmatprep.subr.bf16.mxu1 %v501_v21 }
  0x1f   :  { %464 = vmatpush3.bf16.msra.mxu0 %v501_v21  ;;  %488 = vmatpush3.bf16.msra.mxu1 %v501_v21 }
  0x22   :  { %466 = vmatmul.mubr.bf16.vlgmr.msra.gmra.mrb[0].mxu0 %v46_v26  ;;  %470 = vmatmul.mubr.bf16.vlgmr.msra.gmra.mrb[0].mxu1 %v48_v27 }
  0xf5   :  { %v467_v30 = vpop.f32.mrb[0].mxu0  ;;  %v471_v31 = vpop.f32.mrb[0].mxu1 }
  0xf6   :  { %v660_v32 = vadd.f32 %v467_v30, %v428_v29  ;;  %v154_v33 = vpop.f32.mrb[1].mxu0  ;;  %v170_v34 = vpop.f32.mrb[1].mxu1  ;;  %v680_v45 = vadd.f32 %v471_v31, %v428_v29 }
  0xf7   :  { %v662_v35 = vadd.f32 %v428_v29, %v154_v33  ;;  %v468_v36 = vpop.f32.mrb[2].mxu0  ;;  %v472_v37 = vpop.f32.mrb[2].mxu1  ;;  %v665_v40 = vadd.f32 %v428_v29, %v170_v34 }
  0xf8   :  { %189 = vmax.xlane.f32.xlu1 %v660_v32  ;;  %v157_v38 = vpop.f32.mrb[3].mxu0  ;;  %v173_v39 = vpop.f32.mrb[3].mxu1  ;;  %v670_v42 = vadd.f32 %v468_v36, %v428_v29  ;;  %v674_v43 = vadd.f32 %v472_v37, %v428_v29  ;;  %v748_v36 = vld [vmem:[%s849_s4] sm:$0xff] }
  0xf9   :  { %185 = vmax.xlane.f32.xlu0 %v662_v35  ;;  %v668_v41 = vadd.f32 %v428_v29, %v173_v39  ;;  %v676_v44 = vadd.f32 %v428_v29, %v157_v38  ;;  %v382_v38 = vsel %vm356_vm6, %v748_v36, 0.0  ;;  %v756_v39 = vld [vmem:[%s849_s4 + $0x10] sm:$0xff] }
  0xfc   :  { %191 = vmax.xlane.f32.xlu1 %v670_v42 }
  0xfd   :  { %193 = vmax.xlane.f32.xlu0 %v665_v40 }
 0x100   :  { %199 = vmax.xlane.f32.xlu1 %v674_v43 }
 0x101   :  { %187 = vmax.xlane.f32.xlu0 %v676_v44 }
 0x105   :  { %197 = vmax.xlane.f32.xlu0 %v680_v45 }
 0x111   :  { %279 = vperm.xlu1 %493, %v268_v46  }
 0x115   :  { %282 = vperm.xlu1 %493, %v269_v47  }
 0x119   :  { %285 = vperm.xlu1 %493, %v270_v48   ;;  %v771_v48 = vld [vmem:[%s849_s4 + $0x20] sm:$0xff] }
 0x11b   :  { %276 = vperm.xlu0 %492, %v267_v49   ;;  %v776_v49 = vld [vmem:[%s849_s4 + $0x18] sm:$0xff] }
 0x11d   :  { %288 = vperm.xlu1 %493, %v271_v50  }
 0x121   :  { %291 = vperm.xlu1 %493, %v272_v51   ;;  %v389_v51 = vsel %vm356_vm6, %v771_v48, 0.0 }
 0x145   :  { %195 = vmax.xlane.f32.xlu1 %v668_v41 }
 0x156   :  { %294 = vperm.xlu1 %493, %v273_v52   ;;  %v387_v52 = vsel %vm356_vm6, %v776_v49, 0.0 }
 0x15a   :  { %297 = vperm.xlu1 %493, %v274_v53  }
 0x185   :  { %v708_v54 = vpop.xlane.xlu1 %189 }
 0x186   :  { %v710_v55 = vpop.xlane.xlu0 %185  ;;  %v203_v63 = vsub.f32 %v660_v32, %v708_v54 }
 0x187   :  { %v201_v56 = vsub.f32 %v662_v35, %v710_v55 }
 0x188   :  { %v213_v2 = vmul.f32 1.442695, %v203_v63 }
 0x189   :  { %v209_v57 = vmul.f32 1.442695, %v201_v56  ;;  %v714_v58 = vpop.xlane.xlu1 %191  ;;  %v786_v56 = vld [vmem:[%s849_s4 + $0x30] sm:$0xff] }
 0x18a   :  { %v204_v59 = vsub.f32 %v670_v42, %v714_v58  ;;  %v718_v60 = vpop.xlane.xlu0 %193 }
 0x18b   :  { %518 = vpow2.f32 %v209_v57  ;;  %v205_v3 = vsub.f32 %v665_v40, %v718_v60  ;;  %v791_v57 = vld [vmem:[%s849_s4 + $0x28] sm:$0xff] }
 0x18c   :  { %v215_v61 = vmul.f32 1.442695, %v204_v59  ;;  %v391_v63 = vsel %vm356_vm6, %v791_v57, 0.0 }
 0x18d   :  { %v217_v6 = vmul.f32 1.442695, %v205_v3  ;;  %v730_v7 = vpop.xlane.xlu1 %199 }
 0x18e   :  { %520 = vpow2.f32 %v215_v61  ;;  %v720_v62 = vpop.xlane.xlu0 %187  ;;  %v208_v27 = vsub.f32 %v674_v43, %v730_v7  ;;  %v393_v61 = vsel %vm356_vm6, %v786_v56, 0.0 }
 0x18f   :  { %v202_v0 = vsub.f32 %v676_v44, %v720_v62 }
 0x190   :  { %v223_v31 = vmul.f32 1.442695, %v208_v27 }
 0x191   :  { %v211_v1 = vmul.f32 1.442695, %v202_v0  ;;  %v280_v12 = vpop.permute.xlu1 %279 }
 0x192   :  { %v728_v4 = vpop.xlane.xlu0 %197  ;;  %vm300_vm4 = vcmp.eq.s32.totalorder %v266_v18, %v280_v12 }
 0x193   :  { %522 = vpow2.f32 %v211_v1  ;;  %v207_v8 = vsub.f32 %v680_v45, %v728_v4 }
 0x194   :  { %524 = vpow2.f32 %v213_v2 }
 0x195   :  { %v519_v5 = vpop.eup %518  ;;  %526 = vpow2.f32 %v217_v6  ;;  %v221_v10 = vmul.f32 1.442695, %v207_v8  ;;  %v283_v14 = vpop.permute.xlu1 %282 }
 0x196   :  { %225 = vadd.xlane.f32.xlu1 %v519_v5  ;;  %vm301_vm1 = vcmp.eq.s32.totalorder %v266_v18, %v283_v14 }
 0x197   :  { %528 = vpow2.f32 %v221_v10  ;;  %v309_v23 = vsel %vm301_vm1, %v660_v32, 0.0 }
 0x198   :  { %v521_v9 = vpop.eup %520 }
 0x199   :  { %v286_v20 = vpop.permute.xlu1 %285 }
 0x19a   :  { %231 = vadd.xlane.f32.xlu1 %v521_v9  ;;  %v277_v17 = vpop.permute.xlu0 %276  ;;  %vm302_vm5 = vcmp.eq.s32.totalorder %v266_v18, %v286_v20  ;;  %v577_v9 = vmov 0.0  }
 0x19b   :  { %vm299_vm0 = vcmp.eq.s32.totalorder %v266_v18, %v277_v17  ;;  %v310_v37 = vsel %vm302_vm5, %v670_v42, 0.0  ;;  %27 = vst.msk [vmem:[#allocation2] sm:$0x1] %vm26_vm9, %v577_v9  ;;  %28 = vst.msk [vmem:[#allocation3] sm:$0x1] %vm26_vm9, %v577_v9 }
 0x19c   :  { %v307_v21 = vsel %vm299_vm0, %v662_v35, 0.0  ;;  %v308_v35 = vsel %vm300_vm4, %v676_v44, 0.0 }
 0x19d   :  { %v523_v11 = vpop.eup %522  ;;  %v289_v22 = vpop.permute.xlu1 %288 }
 0x19e   :  { %227 = vadd.xlane.f32.xlu0 %v523_v11  ;;  %v525_v13 = vpop.eup %524  ;;  %vm303_vm2 = vcmp.eq.s32.totalorder %v266_v18, %v289_v22 }
 0x19f   :  { %v527_v16 = vpop.eup %526  ;;  %v311_v24 = vsel %vm303_vm2, %v665_v40, 0.0  ;;  %v761_v40 = vld [vmem:[%s849_s4 + $0x8] sm:$0xff] }
 0x1a0   :  { %v383_v42 = vsel %vm356_vm6, %v761_v40, 0.0 }
 0x1a1   :  { %v529_v19 = vpop.eup %528  ;;  %v292_v25 = vpop.permute.xlu1 %291  ;;  %v384_v46 = vadd.f32 %v383_v42, %v382_v38 }
 0x1a2   :  { %229 = vadd.xlane.f32.xlu0 %v525_v13  ;;  %vm304_vm7 = vcmp.eq.s32.totalorder %v266_v18, %v292_v25  ;;  %v381_v13 = vld [vmem:[#allocation3] sm:$0x1] }
 0x1a3   :  { %v312_v47 = vsel %vm304_vm7, %v668_v41, 0.0 }
 0x1a6   :  { %233 = vadd.xlane.f32.xlu0 %v527_v16 }
 0x1aa   :  { %237 = vadd.xlane.f32.xlu0 %v529_v19 }
 0x1ae   :  { %315 = vadd.xlane.f32.xlu0 %v307_v21 }
 0x1b2   :  { %319 = vadd.xlane.f32.xlu0 %v309_v23 }
 0x1b6   :  { %323 = vadd.xlane.f32.xlu0 %v311_v24 }
 0x1d2   :  { %v737_v26 = vpop.xlane.xlu1 %195 }
 0x1d3   :  { %v206_v28 = vsub.f32 %v668_v41, %v737_v26 }
 0x1d5   :  { %v219_v29 = vmul.f32 1.442695, %v206_v28 }
 0x1d6   :  { %v295_v30 = vpop.permute.xlu1 %294 }
 0x1d7   :  { %530 = vpow2.f32 %v219_v29  ;;  %vm305_vm3 = vcmp.eq.s32.totalorder %v266_v18, %v295_v30 }
 0x1d8   :  { %v313_v32 = vsel %vm305_vm3, %v680_v45, 0.0  ;;  %532 = vpow2.f32 %v223_v31  ;;  %v385_v45 = vsel %vm356_vm6, %v756_v39, 0.0 }
 0x1d9   :  { %327 = vadd.xlane.f32.xlu0 %v313_v32  ;;  %v386_v50 = vadd.f32 %v385_v45, %v384_v46 }
 0x1da   :  { %v298_v44 = vpop.permute.xlu1 %297 }
 0x1db   :  { %vm306_vm8 = vcmp.eq.s32.totalorder %v266_v18, %v298_v44  ;;  %v388_v41 = vadd.f32 %v387_v52, %v386_v50 }
 0x1dc   :  { %v314_v53 = vsel %vm306_vm8, %v674_v43, 0.0  ;;  %v800_v43 = vld [vmem:[%s849_s4 + $0x38] sm:$0xff]  ;;  %s578_s4 = smov [#allocation4]  }
 0x1dd   :  { %v390_v59 = vadd.f32 %v389_v51, %v388_v41  ;;  %v395_v2 = vsel %vm356_vm6, %v800_v43, 0.0  ;;  %s420_s27 = sshll.u32 %s578_s4, 4  ;;  %s421_s27 = int_to_ptr.vmem [resolvable:$true] %s420_s27 }
 0x1de   :  { %s552_s28 = scalar_lea.vmem %s421_s27, 16  ;;  %s556_s29 = scalar_lea.vmem %s421_s27, 32 }
 0x1df   :  { %v392_v0 = vadd.f32 %v391_v63, %v390_v59  ;;  %p553_p0 = scmp.ne.s32.totalorder %s421_s27, %s552_s28  ;;  %p557_p1 = scmp.lt.s32.totalorder %s421_s27, %s421_s27 }
 0x1e0   :  { %p558_p2 = scmp.lt.s32.totalorder %s556_s29, %s552_s28 }
 0x1e1   :  { %v531_v33 = vpop.eup %530  ;;  %v394_v1 = vadd.f32 %v393_v61, %v392_v0 }
 0x1e2   :  { %235 = vadd.xlane.f32.xlu1 %v531_v33  ;;  %v533_v34 = vpop.eup %532  ;;  %p559_p3 = por %p558_p2, %p557_p1 }
 0x1e3   :  { %v396_v3 = vadd.f32 %v395_v2, %v394_v1 }
 0x1e4   :  { %p560_p4 = pnand %p559_p3, %p553_p0 }
 0x1e5   :  { %v397_v5 = vrot.slane %v396_v3, 4 }
 0x1e6   :  { %239 = vadd.xlane.f32.xlu1 %v533_v34 }
 0x1e7   :  { %v398_v6 = vadd.f32 %v397_v5, %v396_v3 }
 0x1e9   :  { %v399_v8 = vrot.slane %v398_v6, 2 }
 0x1ea   :  { %317 = vadd.xlane.f32.xlu1 %v308_v35 }
 0x1eb   :  { %v400_v10 = vadd.f32 %v399_v8, %v398_v6 }
 0x1ed   :  { %v401_v11 = vrot.slane %v400_v10, 1 }
 0x1ee   :  { %321 = vadd.xlane.f32.xlu1 %v310_v37 }
 0x1ef   :  { %v402_v12 = vadd.f32 %v401_v11, %v400_v10 }
 0x1f1   :  { %v403_v14 = vadd.f32 %v402_v12, %v381_v13 }
 0x1f2   :  { %325 = vadd.xlane.f32.xlu1 %v312_v47 }
 0x1f3   :  { %404 = vst.msk [vmem:[#allocation3] sm:$0x1] %vm26_vm9, %v403_v14 }
 0x1f6   :  { %329 = vadd.xlane.f32.xlu1 %v314_v53 }
 0x223   :  { %v226_v17 = vpop.xlane.xlu1 %225 }
 0x224   :  { %534 = vlog2.f32 %v226_v17 }
 0x227   :  { %v232_v20 = vpop.xlane.xlu1 %231 }
 0x22b   :  { %v228_v15 = vpop.xlane.xlu0 %227 }
 0x22e   :  { %v535_v21 = vpop.eup %534 }
 0x22f   :  { %v230_v16 = vpop.xlane.xlu0 %229  ;;  %v242_v25 = vmul.f32 0.6931472, %v535_v21 }
 0x230   :  { %536 = vlog2.f32 %v230_v16 }
 0x231   :  { %538 = vlog2.f32 %v228_v15  ;;  %v257_v33 = vadd.f32 %v242_v25, %v710_v55 }
 0x233   :  { %v234_v18 = vpop.xlane.xlu0 %233 }
 0x234   :  { %540 = vlog2.f32 %v234_v18 }
 0x235   :  { %542 = vlog2.f32 %v232_v20 }
 0x237   :  { %v238_v19 = vpop.xlane.xlu0 %237 }
 0x238   :  { %544 = vlog2.f32 %v238_v19 }
 0x23a   :  { %v537_v22 = vpop.eup %536 }
 0x23b   :  { %v316_v23 = vpop.xlane.xlu0 %315  ;;  %v539_v24 = vpop.eup %538  ;;  %v246_v27 = vmul.f32 0.6931472, %v537_v22 }
 0x23c   :  { %v244_v31 = vmul.f32 0.6931472, %v539_v24  ;;  %v339_v38 = vsub.f32 %v257_v33, %v316_v23 }
 0x23d   :  { %v259_v34 = vadd.f32 %v246_v27, %v708_v54 }
 0x23e   :  { %v541_v28 = vpop.eup %540  ;;  %v258_v47 = vadd.f32 %v244_v31, %v720_v62  ;;  %v347_v41 = vmul.f32 %v339_v38, %v748_v36  ;;  %v355_v31 = vld [vmem:[#allocation2] sm:$0x1] }
 0x23f   :  { %v320_v30 = vpop.xlane.xlu0 %319  ;;  %v250_v32 = vmul.f32 0.6931472, %v541_v28  ;;  %v543_v35 = vpop.eup %542  ;;  %v409_v28 = vld [vmem:[#allocation3] sm:$0x1] }
 0x240   :  { %v248_v45 = vmul.f32 0.6931472, %v543_v35  ;;  %v341_v42 = vsub.f32 %v259_v34, %v320_v30 }
 0x241   :  { %v261_v46 = vadd.f32 %v250_v32, %v718_v60  ;;  %v357_v60 = vsel %vm356_vm6, %v347_v41, 0.0 }
 0x242   :  { %v545_v44 = vpop.eup %544  ;;  %v349_v54 = vmul.f32 %v341_v42, %v756_v39  ;;  %v260_v63 = vadd.f32 %v248_v45, %v714_v58 }
 0x243   :  { %v324_v50 = vpop.xlane.xlu0 %323  ;;  %v254_v52 = vmul.f32 0.6931472, %v545_v44 }
 0x244   :  { %v343_v59 = vsub.f32 %v261_v46, %v324_v50  ;;  %v360_v39 = vsel %vm356_vm6, %v349_v54, 0.0 }
 0x245   :  { %v263_v62 = vadd.f32 %v254_v52, %v728_v4 }
 0x266   :  { %v328_v0 = vpop.xlane.xlu0 %327 }
 0x267   :  { %v345_v9 = vsub.f32 %v263_v62, %v328_v0 }
 0x26f   :  { %v236_v29 = vpop.xlane.xlu1 %235 }
 0x270   :  { %546 = vlog2.f32 %v236_v29  ;;  %v410_v29 = vmax.f32 %v409_v28, 1.0 }
 0x273   :  { %v240_v37 = vpop.xlane.xlu1 %239 }
 0x274   :  { %548 = vlog2.f32 %v240_v37 }
 0x275   :  { %550 = vrcp.f32 %v410_v29 }
 0x277   :  { %v318_v51 = vpop.xlane.xlu1 %317 }
 0x278   :  { %v340_v53 = vsub.f32 %v258_v47, %v318_v51 }
 0x27a   :  { %v547_v55 = vpop.eup %546  ;;  %v348_v61 = vmul.f32 %v340_v53, %v761_v40  ;;  %v351_v40 = vmul.f32 %v343_v59, %v771_v48 }
 0x27b   :  { %v252_v1 = vmul.f32 0.6931472, %v547_v55  ;;  %v322_v2 = vpop.xlane.xlu1 %321 }
 0x27c   :  { %v358_v3 = vsel %vm356_vm6, %v348_v61, 0.0  ;;  %v342_v5 = vsub.f32 %v260_v63, %v322_v2  ;;  %v364_v16 = vsel %vm356_vm6, %v351_v40, 0.0 }
 0x27d   :  { %v359_v36 = vadd.f32 %v358_v3, %v357_v60  ;;  %v262_v6 = vadd.f32 %v252_v1, %v737_v26  ;;  %v353_v26 = vmul.f32 %v345_v9, %v786_v56 }
 0x27e   :  { %v549_v8 = vpop.eup %548  ;;  %v350_v58 = vmul.f32 %v342_v5, %v776_v49 }
 0x27f   :  { %v256_v10 = vmul.f32 0.6931472, %v549_v8  ;;  %v361_v11 = vadd.f32 %v360_v39, %v359_v36  ;;  %v326_v12 = vpop.xlane.xlu1 %325  ;;  %v368_v21 = vsel %vm356_vm6, %v353_v26, 0.0  ;;  %v551_v34 = vpop.eup %550 }
 0x280   :  { %v362_v13 = vsel %vm356_vm6, %v350_v58, 0.0  ;;  %v344_v4 = vsub.f32 %v262_v6, %v326_v12 }
 0x281   :  { %v363_v14 = vadd.f32 %v362_v13, %v361_v11  ;;  %v264_v15 = vadd.f32 %v256_v10, %v730_v7 }
 0x282   :  { %v352_v17 = vmul.f32 %v344_v4, %v791_v57 }
 0x283   :  { %v365_v18 = vadd.f32 %v364_v16, %v363_v14  ;;  %v330_v48 = vpop.xlane.xlu1 %329 }
 0x284   :  { %v366_v19 = vsel %vm356_vm6, %v352_v17, 0.0  ;;  %v346_v49 = vsub.f32 %v264_v15, %v330_v48 }
 0x285   :  { %v367_v20 = vadd.f32 %v366_v19, %v365_v18 }
 0x286   :  { %v354_v22 = vmul.f32 %v346_v49, %v800_v43 }
 0x287   :  { %v369_v23 = vadd.f32 %v368_v21, %v367_v20 }
 0x288   :  { %v370_v24 = vsel %vm356_vm6, %v354_v22, 0.0 }
 0x289   :  { %v371_v7 = vadd.f32 %v370_v24, %v369_v23 }
 0x28b   :  { %v372_v25 = vrot.slane %v371_v7, 4 }
 0x28d   :  { %v373_v27 = vadd.f32 %v372_v25, %v371_v7 }
 0x28f   :  { %v374_v56 = vrot.slane %v373_v27, 2 }
 0x291   :  { %v375_v57 = vadd.f32 %v374_v56, %v373_v27 }
 0x293   :  { %v376_v30 = vrot.slane %v375_v57, 1 }
 0x295   :  { %v377_v32 = vadd.f32 %v376_v30, %v375_v57 }
 0x297   :  { %v378_v33 = vadd.f32 %v377_v32, %v355_v31 }
 0x299   :  { %380 = vst.msk [vmem:[#allocation2] sm:$0x1] %vm26_vm9, %v378_v33 }
 0x2a0   :  { %v408_v43 = vld [vmem:[#allocation2] sm:$0x1] }
 0x2a1   :  { %v412_v35 = vmul.f32 %v551_v34, %v408_v43 }
 0x2a3   :  { %413 = vst.msk [vmem:[#allocation4] sm:$0x1] %vm26_vm9, %v412_v35 }
 0x2a4   :  { %563 = shalt.err (!%p560_p4)
}
 0x2a5   :  { %s564_s7 = scalar_lea.hbm %s850_s5, 16 }
 0x2a6   :  { %p565_p5 = scmp.ne.s32.totalorder %s850_s5, %s564_s7  ;;  %p568_p6 = scmp.lt.u32.totalorder %s564_s7, %s850_s5 }
 0x2a8   :  { %p570_p7 = pnand %p568_p6, %p565_p5 }
 0x2aa   :  { %573 = shalt.err (!%p570_p7)
}
 0x2ab   :  { %423 = dma.vmem_to_hbm [thread:$0]  %s421_s27, 16, %s850_s5, [#allocation5]  }
 0x2ac   :  { %574 = dma.done.wait [#allocation5], 16  }
 0x2ad   :  { %575 = vsyncadd [#allocation5], 4294967280 }
 0x2ae   :  { %427 = vsyncpa [#allocation5], 1 }

// kernel: lm_forward.2
= control target key start
LH: loop header
LB: loop body
LE: loop exit
PB: predicated region body
PF: predicated region fallthrough
CT: control target
= control target key end

     0   :  { %v4233_v1 = vmov 0   ;;  %vm116_vm0 = vcmask 261120   ;;  %v3397_v45 = vmov 0.0|0.0   ;;  %v36_v46 = vlaneseq  ;;  %s4228_s1 = inlined_call_operand.vmem [shape: bf16[32,512], index: 1, kind: input, shape index: {}]   ;;  %s4229_s0 = inlined_call_operand.vmem [shape: bf16[64,32], index: 0, kind: input, shape index: {}]   ;;  %s4230_s2 = inlined_call_operand.vmem [shape: bf16[128,512], index: 2, kind: input, shape index: {}]   ;;  %s4231_s3 = inlined_call_operand.vmem [shape: f32[1,512], index: 3, kind: input, shape index: {}]   ;;  %s4232_s4 = inlined_call_operand.vmem [shape: f32[64,128], index: 4, kind: output, shape index: {}]  }
   0x1   :  { %v3156_v0 = vld [vmem:[%s4228_s1 + $0x4] ss:$16 sps:$4 sm:$0xff]   ;;  %161 = vmatprep.mubr.bf16.mxu0 %v4233_v1  ;;  %234 = vmatprep.mubr.bf16.mxu1 %v4233_v1  ;;  %v3158_v2 = vld [vmem:[%s4228_s1 + $0xc] ss:$16 sps:$4 sm:$0xff]   ;;  %v3160_v3 = vld [vmem:[%s4228_s1] ss:$16 sps:$4 sm:$0xff]  }
   0x2   :  { %129 = vmatprep.subr.bf16.mxu0 %v3156_v0  ;;  %v3161_v4 = vld [vmem:[%s4228_s1 + $0x8] ss:$16 sps:$4 sm:$0xff]   ;;  %202 = vmatprep.subr.bf16.mxu1 %v3158_v2  ;;  %v3162_v5 = vld [vmem:[%s4228_s1 + $0x24] ss:$16 sps:$4 sm:$0xff]   ;;  %v3164_v6 = vld [vmem:[%s4228_s1 + $0x2c] ss:$16 sps:$4 sm:$0xff]  }
   0x3   :  { %130 = vmatpush1.bf16.msra.mxu0 %v3160_v3  ;;  %203 = vmatpush1.bf16.msra.mxu1 %v3161_v4  ;;  %v3166_v7 = vld [vmem:[%s4228_s1 + $0x20] ss:$16 sps:$4 sm:$0xff]   ;;  %v3167_v8 = vld [vmem:[%s4228_s1 + $0x28] ss:$16 sps:$4 sm:$0xff]   ;;  %v3460_v11 = vld [vmem:[%s4230_s2 + $0x4] ss:$16 sps:$4 sm:$0xff]  }
   0x4   :  { %131 = vmatprep.subr.bf16.mxu0 %v3162_v5  ;;  %204 = vmatprep.subr.bf16.mxu1 %v3164_v6  ;;  %v3168_v9 = vld [vmem:[%s4229_s0] sm:$0xff]   ;;  %v3465_v12 = vld [vmem:[%s4230_s2 + $0x8] ss:$16 sps:$4 sm:$0xff]   ;;  %v3470_v13 = vld [vmem:[%s4230_s2 + $0xc] ss:$16 sps:$4 sm:$0xff]   ;;  %v37_v47 = vshrl.u32 %v36_v46, 7 }
   0x5   :  { %v3455_v10 = vld [vmem:[%s4230_s2] ss:$16 sps:$4 sm:$0xff]   ;;  %v3477_v14 = vld [vmem:[%s4230_s2 + $0x24] ss:$16 sps:$4 sm:$0xff]   ;;  %v3489_v16 = vld [vmem:[%s4230_s2 + $0x2c] ss:$16 sps:$4 sm:$0xff]  }
   0x6   :  { %v3484_v15 = vld [vmem:[%s4230_s2 + $0x20] ss:$16 sps:$4 sm:$0xff]   ;;  %v3496_v17 = vld [vmem:[%s4230_s2 + $0x28] ss:$16 sps:$4 sm:$0xff]   ;;  %v3503_v18 = vld [vmem:[%s4230_s2 + $0x44] ss:$16 sps:$4 sm:$0xff]  }
   0x7   :  { %132 = vmatpush1.bf16.msra.mxu0 %v3166_v7  ;;  %205 = vmatpush1.bf16.msra.mxu1 %v3167_v8  ;;  %v3181_v19 = vld [vmem:[%s4229_s0 + $0x8] sm:$0xff]   ;;  %v3520_v21 = vld [vmem:[%s4230_s2 + $0x40] ss:$16 sps:$4 sm:$0xff]   ;;  %v3532_v23 = vld [vmem:[%s4230_s2 + $0x64] ss:$16 sps:$4 sm:$0xff]   ;;  %v46_v48 = vsub.s32 2, %v37_v47 }
   0x8   :  { %510 = vmatprep.subr.bf16.mxu0 %v3460_v11  ;;  %551 = vmatprep.subr.bf16.mxu1 %v3470_v13  ;;  %v3513_v20 = vld [vmem:[%s4230_s2 + $0x4c] ss:$16 sps:$4 sm:$0xff]   ;;  %v3525_v22 = vld [vmem:[%s4230_s2 + $0x48] ss:$16 sps:$4 sm:$0xff]   ;;  %v3544_v25 = vld [vmem:[%s4230_s2 + $0x60] ss:$16 sps:$4 sm:$0xff]  }
   0x9   :  { %v3537_v24 = vld [vmem:[%s4230_s2 + $0x6c] ss:$16 sps:$4 sm:$0xff]   ;;  %v3551_v26 = vld [vmem:[%s4230_s2 + $0x68] ss:$16 sps:$4 sm:$0xff]   ;;  %v3558_v27 = vld [vmem:[%s4230_s2 + $0x84] ss:$16 sps:$4 sm:$0xff]  }
   0xa   :  { %2859 = vmatmul.mubr.msk.bf16.vlgmr.msra.gmra.mrb[0].mxu0 %vm116_vm0, %v3168_v9  ;;  %2863 = vmatmul.mubr.msk.bf16.vlgmr.msra.gmra.mrb[0].mxu1 %vm116_vm0, %v3168_v9  ;;  %v3563_v28 = vld [vmem:[%s4230_s2 + $0x8c] ss:$16 sps:$4 sm:$0xff]   ;;  %v3194_v29 = vld [vmem:[%s4229_s0 + $0x10] sm:$0xff]   ;;  %v3578_v31 = vld [vmem:[%s4230_s2 + $0x88] ss:$16 sps:$4 sm:$0xff]   ;;  %v50_v49 = vsub.s32 3, %v37_v47 }
   0xb   :  { %511 = vmatpush1.bf16.msra.mxu0 %v3455_v10  ;;  %552 = vmatpush1.bf16.msra.mxu1 %v3465_v12  ;;  %v3573_v30 = vld [vmem:[%s4230_s2 + $0x80] ss:$16 sps:$4 sm:$0xff]   ;;  %v3585_v32 = vld [vmem:[%s4230_s2 + $0xa4] ss:$16 sps:$4 sm:$0xff]   ;;  %v3592_v33 = vld [vmem:[%s4230_s2 + $0xac] ss:$16 sps:$4 sm:$0xff]  }
   0xc   :  { %512 = vmatprep.subr.bf16.mxu0 %v3477_v14  ;;  %553 = vmatprep.subr.bf16.mxu1 %v3489_v16  ;;  %v3599_v34 = vld [vmem:[%s4230_s2 + $0xa0] ss:$16 sps:$4 sm:$0xff]   ;;  %v3604_v35 = vld [vmem:[%s4230_s2 + $0xa8] ss:$16 sps:$4 sm:$0xff]   ;;  %v3611_v36 = vld [vmem:[%s4230_s2 + $0xc4] ss:$16 sps:$4 sm:$0xff]  }
   0xd   :  { %171 = vmatprep.mubr.bf16.mxu0 %v4233_v1  ;;  %244 = vmatprep.mubr.bf16.mxu1 %v4233_v1  ;;  %v3618_v37 = vld [vmem:[%s4230_s2 + $0xcc] ss:$16 sps:$4 sm:$0xff]   ;;  %v3628_v39 = vld [vmem:[%s4230_s2 + $0xc0] ss:$16 sps:$4 sm:$0xff]   ;;  %v3633_v40 = vld [vmem:[%s4230_s2 + $0xc8] ss:$16 sps:$4 sm:$0xff]  }
   0xe   :  { %v3207_v38 = vld [vmem:[%s4229_s0 + $0x18] sm:$0xff]   ;;  %v3638_v41 = vld [vmem:[%s4230_s2 + $0xe4] ss:$16 sps:$4 sm:$0xff]   ;;  %v3652_v43 = vld [vmem:[%s4230_s2 + $0xe0] ss:$16 sps:$4 sm:$0xff]   ;;  %v38_v50 = vsub.s32 0, %v37_v47 }
   0xf   :  { %513 = vmatpush1.bf16.msra.mxu0 %v3484_v15  ;;  %554 = vmatpush1.bf16.msra.mxu1 %v3496_v17  ;;  %v3643_v42 = vld [vmem:[%s4230_s2 + $0xec] ss:$16 sps:$4 sm:$0xff]   ;;  %v3657_v44 = vld [vmem:[%s4230_s2 + $0xe8] ss:$16 sps:$4 sm:$0xff]   ;;  %v34_v51 = vld [vmem:[%s4231_s3] sm:$0xf] }
  0x10   :  { %514 = vmatprep.subr.bf16.mxu0 %v3503_v18  ;;  %555 = vmatprep.subr.bf16.mxu1 %v3513_v20  ;;  %v42_v52 = vsub.s32 1, %v37_v47  ;;  %v3708_v53 = vrot.slane %v34_v51, %v46_v48  ;;  %v3714_v56 = vrot.slane %v34_v51, %v50_v49  ;;  %v39_v57 = vrot.slane %v34_v51, %v38_v50 }
  0x12   :  { %2860 = vmatmul.mubr.msk.bf16.gmra.mrb[4].mxu0 %vm116_vm0, %v3181_v19  ;;  %2864 = vmatmul.mubr.msk.bf16.gmra.mrb[4].mxu1 %vm116_vm0, %v3181_v19  ;;  %v43_v60 = vrot.slane %v34_v51, %v42_v52 }
  0x13   :  { %515 = vmatpush1.bf16.msra.mxu0 %v3520_v21  ;;  %556 = vmatpush1.bf16.msra.mxu1 %v3525_v22 }
  0x14   :  { %516 = vmatprep.subr.bf16.mxu0 %v3532_v23  ;;  %557 = vmatprep.subr.bf16.mxu1 %v3537_v24 }
  0x15   :  { %181 = vmatprep.mubr.bf16.mxu0 %v4233_v1  ;;  %254 = vmatprep.mubr.bf16.mxu1 %v4233_v1 }
  0x17   :  { %517 = vmatpush1.bf16.msra.mxu0 %v3544_v25  ;;  %558 = vmatpush1.bf16.msra.mxu1 %v3551_v26 }
  0x18   :  { %518 = vmatprep.subr.bf16.mxu0 %v3558_v27  ;;  %559 = vmatprep.subr.bf16.mxu1 %v3563_v28 }
  0x1a   :  { %2861 = vmatmul.mubr.msk.bf16.gmra.mrb[8].mxu0 %vm116_vm0, %v3194_v29  ;;  %2865 = vmatmul.mubr.msk.bf16.gmra.mrb[8].mxu1 %vm116_vm0, %v3194_v29 }
  0x1b   :  { %519 = vmatpush1.bf16.msra.mxu0 %v3573_v30  ;;  %560 = vmatpush1.bf16.msra.mxu1 %v3578_v31 }
  0x1c   :  { %520 = vmatprep.subr.bf16.mxu0 %v3585_v32  ;;  %561 = vmatprep.subr.bf16.mxu1 %v3592_v33 }
  0x1d   :  { %191 = vmatprep.mubr.bf16.mxu0 %v4233_v1  ;;  %264 = vmatprep.mubr.bf16.mxu1 %v4233_v1 }
  0x1f   :  { %521 = vmatpush1.bf16.msra.mxu0 %v3599_v34  ;;  %562 = vmatpush1.bf16.msra.mxu1 %v3604_v35 }
  0x20   :  { %522 = vmatprep.subr.bf16.mxu0 %v3611_v36  ;;  %563 = vmatprep.subr.bf16.mxu1 %v3618_v37 }
  0x22   :  { %2862 = vmatmul.mubr.msk.bf16.gmra.mrb[12].mxu0 %vm116_vm0, %v3207_v38  ;;  %2866 = vmatmul.mubr.msk.bf16.gmra.mrb[12].mxu1 %vm116_vm0, %v3207_v38 }
  0x23   :  { %523 = vmatpush1.bf16.msra.mxu0 %v3628_v39  ;;  %564 = vmatpush1.bf16.msra.mxu1 %v3633_v40 }
  0x24   :  { %524 = vmatprep.subr.bf16.mxu0 %v3638_v41  ;;  %565 = vmatprep.subr.bf16.mxu1 %v3643_v42 }
  0x25   :  { %542 = vmatprep.mubr.bf16.mxu0 %v4233_v1  ;;  %583 = vmatprep.mubr.bf16.mxu1 %v4233_v1 }
  0x27   :  { %525 = vmatpush1.bf16.msra.mxu0 %v3652_v43  ;;  %566 = vmatpush1.bf16.msra.mxu1 %v3657_v44 }
  0x28   :  { %825 = vmatprep.subr.bf16.mxu0 %v3460_v11  ;;  %866 = vmatprep.subr.bf16.mxu1 %v3470_v13 }
  0x2a   :  { %543 = vmatmul.mubr.bf16.vlgmr.msra.gmra.mrb[16].mxu0 %v3397_v45  ;;  %584 = vmatmul.mubr.bf16.vlgmr.msra.gmra.mrb[16].mxu1 %v3397_v45 }
  0x2b   :  { %826 = vmatpush1.bf16.msra.mxu0 %v3455_v10  ;;  %867 = vmatpush1.bf16.msra.mxu1 %v3465_v12 }
  0x2c   :  { %827 = vmatprep.subr.bf16.mxu0 %v3477_v14  ;;  %868 = vmatprep.subr.bf16.mxu1 %v3489_v16 }
  0x2d   :  { %857 = vmatprep.mubr.bf16.mxu0 %v4233_v1  ;;  %898 = vmatprep.mubr.bf16.mxu1 %v4233_v1 }
  0x2f   :  { %828 = vmatpush1.bf16.msra.mxu0 %v3484_v15  ;;  %869 = vmatpush1.bf16.msra.mxu1 %v3496_v17 }
  0x30   :  { %829 = vmatprep.subr.bf16.mxu0 %v3503_v18  ;;  %870 = vmatprep.subr.bf16.mxu1 %v3513_v20 }
  0x33   :  { %830 = vmatpush1.bf16.msra.mxu0 %v3520_v21  ;;  %871 = vmatpush1.bf16.msra.mxu1 %v3525_v22 }
  0x34   :  { %831 = vmatprep.subr.bf16.mxu0 %v3532_v23  ;;  %872 = vmatprep.subr.bf16.mxu1 %v3537_v24 }
  0x37   :  { %832 = vmatpush1.bf16.msra.mxu0 %v3544_v25  ;;  %873 = vmatpush1.bf16.msra.mxu1 %v3551_v26 }
  0x38   :  { %833 = vmatprep.subr.bf16.mxu0 %v3558_v27  ;;  %874 = vmatprep.subr.bf16.mxu1 %v3563_v28 }
  0x3b   :  { %834 = vmatpush1.bf16.msra.mxu0 %v3573_v30  ;;  %875 = vmatpush1.bf16.msra.mxu1 %v3578_v31 }
  0x3c   :  { %835 = vmatprep.subr.bf16.mxu0 %v3585_v32  ;;  %876 = vmatprep.subr.bf16.mxu1 %v3592_v33 }
  0x3f   :  { %836 = vmatpush1.bf16.msra.mxu0 %v3599_v34  ;;  %877 = vmatpush1.bf16.msra.mxu1 %v3604_v35 }
  0x40   :  { %837 = vmatprep.subr.bf16.mxu0 %v3611_v36  ;;  %878 = vmatprep.subr.bf16.mxu1 %v3618_v37 }
  0x43   :  { %838 = vmatpush1.bf16.msra.mxu0 %v3628_v39  ;;  %879 = vmatpush1.bf16.msra.mxu1 %v3633_v40 }
  0x44   :  { %839 = vmatprep.subr.bf16.mxu0 %v3638_v41  ;;  %880 = vmatprep.subr.bf16.mxu1 %v3643_v42 }
  0x47   :  { %840 = vmatpush1.bf16.msra.mxu0 %v3652_v43  ;;  %881 = vmatpush1.bf16.msra.mxu1 %v3657_v44 }
  0x48   :  { %1141 = vmatprep.subr.bf16.mxu0 %v3460_v11  ;;  %1182 = vmatprep.subr.bf16.mxu1 %v3470_v13 }
  0xdd   :  { %v3710_v54 = vpop.f32.mrb[0].mxu0  ;;  %v3712_v55 = vpop.f32.mrb[0].mxu1 }
  0xde   :  { %v165_v58 = vpop.f32.mrb[1].mxu0  ;;  %v238_v59 = vpop.f32.mrb[1].mxu1 }
  0xdf   :  { %v167_v61 = vpop.f32.mrb[2].mxu0  ;;  %v240_v62 = vpop.f32.mrb[2].mxu1 }
  0xe0   :  { %v3716_v63 = vadd.f32 %v167_v61, %v39_v57  ;;  %v169_v0 = vpop.f32.mrb[3].mxu0  ;;  %v3719_v2 = vadd.f32 %v240_v62, %v3708_v53  ;;  %v242_v3 = vpop.f32.mrb[3].mxu1 }
  0xe1   :  { %v3721_v4 = vadd.f32 %v169_v0, %v43_v60  ;;  %v3724_v5 = vadd.f32 %v242_v3, %v3714_v56 }
  0xe5   :  { %v173_v6 = vpop.f32.mrb[4].mxu0  ;;  %v246_v7 = vpop.f32.mrb[4].mxu1 }
  0xe6   :  { %v3726_v8 = vadd.f32 %v173_v6, %v39_v57  ;;  %v175_v9 = vpop.f32.mrb[5].mxu0  ;;  %v3729_v19 = vadd.f32 %v246_v7, %v3708_v53  ;;  %v248_v29 = vpop.f32.mrb[5].mxu1 }
  0xe7   :  { %v3731_v38 = vadd.f32 %v175_v9, %v43_v60  ;;  %v177_v45 = vpop.f32.mrb[6].mxu0  ;;  %v3734_v46 = vadd.f32 %v248_v29, %v3714_v56  ;;  %v250_v47 = vpop.f32.mrb[6].mxu1 }
  0xe8   :  { %v3736_v48 = vadd.f32 %v177_v45, %v39_v57  ;;  %v179_v49 = vpop.f32.mrb[7].mxu0  ;;  %v3739_v50 = vadd.f32 %v250_v47, %v3708_v53  ;;  %v252_v51 = vpop.f32.mrb[7].mxu1 }
  0xe9   :  { %4235 = vst [vmem:[#allocation5_spill] sm:$0xff] %v3734_v46  ;;  %v3741_v52 = vadd.f32 %v179_v49, %v43_v60  ;;  %v3744_v61 = vadd.f32 %v252_v51, %v3714_v56 }
  0xea   :  { %4236 = vst [vmem:[#allocation6_spill] sm:$0xff] %v3736_v48  ;;  %4237 = vst [vmem:[#allocation7_spill] sm:$0xff] %v3739_v50 }
  0xeb   :  { %4238 = vst [vmem:[#allocation8_spill] sm:$0xff] %v3741_v52  ;;  %4239 = vst [vmem:[#allocation9_spill] sm:$0xff] %v3744_v61 }
  0xed   :  { %v183_v62 = vpop.f32.mrb[8].mxu0  ;;  %v256_v0 = vpop.f32.mrb[8].mxu1 }
  0xee   :  { %v3746_v3 = vadd.f32 %v183_v62, %v39_v57  ;;  %v185_v6 = vpop.f32.mrb[9].mxu0  ;;  %v3749_v7 = vadd.f32 %v256_v0, %v3708_v53  ;;  %v258_v9 = vpop.f32.mrb[9].mxu1 }
  0xef   :  { %v3751_v29 = vadd.f32 %v185_v6, %v43_v60  ;;  %v187_v45 = vpop.f32.mrb[10].mxu0  ;;  %v3754_v47 = vadd.f32 %v258_v9, %v3714_v56  ;;  %v260_v49 = vpop.f32.mrb[10].mxu1 }
  0xf0   :  { %4240 = vst [vmem:[#allocation10_spill] sm:$0xff] %v3746_v3  ;;  %4241 = vst [vmem:[#allocation11_spill] sm:$0xff] %v3749_v7  ;;  %v3756_v1 = vadd.f32 %v187_v45, %v39_v57  ;;  %v189_v51 = vpop.f32.mrb[11].mxu0  ;;  %v3759_v61 = vadd.f32 %v260_v49, %v3708_v53  ;;  %v262_v62 = vpop.f32.mrb[11].mxu1 }
  0xf1   :  { %4242 = vst [vmem:[#allocation12_spill] sm:$0xff] %v3751_v29  ;;  %4243 = vst [vmem:[#allocation13_spill] sm:$0xff] %v3754_v47  ;;  %v3761_v3 = vadd.f32 %v189_v51, %v43_v60  ;;  %v3764_v0 = vadd.f32 %v262_v62, %v3714_v56 }
  0xf2   :  { %4244 = vst [vmem:[#allocation14_spill] sm:$0xff] %v3756_v1  ;;  %4245 = vst [vmem:[#allocation15_spill] sm:$0xff] %v3759_v61 }
  0xf3   :  { %4246 = vst [vmem:[#allocation16_spill] sm:$0xff] %v3761_v3  ;;  %4247 = vst [vmem:[#allocation17_spill] sm:$0xff] %v3764_v0 }
  0xf5   :  { %v193_v7 = vpop.f32.mrb[12].mxu0  ;;  %v266_v6 = vpop.f32.mrb[12].mxu1 }
  0xf6   :  { %v3766_v29 = vadd.f32 %v193_v7, %v39_v57  ;;  %v195_v52 = vpop.f32.mrb[13].mxu0  ;;  %v3769_v9 = vadd.f32 %v266_v6, %v3708_v53  ;;  %v268_v45 = vpop.f32.mrb[13].mxu1 }
  0xf7   :  { %v3771_v1 = vadd.f32 %v195_v52, %v43_v60  ;;  %v197_v47 = vpop.f32.mrb[14].mxu0  ;;  %v3774_v49 = vadd.f32 %v268_v45, %v3714_v56  ;;  %v270_v51 = vpop.f32.mrb[14].mxu1  ;;  %v164_v52 = vadd.f32 %v3710_v54, %v39_v57  ;;  %v166_v45 = vadd.f32 %v165_v58, %v43_v60 }
  0xf8   :  { %4248 = vst [vmem:[#allocation18_spill] sm:$0xff] %v3766_v29  ;;  %4249 = vst [vmem:[#allocation19_spill] sm:$0xff] %v3769_v9  ;;  %v3776_v3 = vadd.f32 %v197_v47, %v39_v57  ;;  %v199_v62 = vpop.f32.mrb[15].mxu0  ;;  %v3779_v0 = vadd.f32 %v270_v51, %v3708_v53  ;;  %v272_v7 = vpop.f32.mrb[15].mxu1 }
  0xf9   :  { %4250 = vst [vmem:[#allocation20_spill] sm:$0xff] %v3771_v1  ;;  %4251 = vst [vmem:[#allocation21_spill] sm:$0xff] %v3774_v49  ;;  %v3781_v29 = vadd.f32 %v199_v62, %v43_v60  ;;  %v3784_v6 = vadd.f32 %v272_v7, %v3714_v56  ;;  %v237_v1 = vadd.f32 %v3712_v55, %v3708_v53 }
  0xfa   :  { %4252 = vst [vmem:[#allocation22_spill] sm:$0xff] %v3776_v3  ;;  %4253 = vst [vmem:[#allocation23_spill] sm:$0xff] %v3779_v0  ;;  %v239_v49 = vadd.f32 %v238_v59, %v3714_v56 }
  0xfb   :  { %4254 = vst [vmem:[#allocation24_spill] sm:$0xff] %v3781_v29  ;;  %4255 = vst [vmem:[#allocation25_spill] sm:$0xff] %v3784_v6 }
  0xfd   :  { %v544_v47 = vpop.f32.mrb[16].mxu0  ;;  %v585_v3 = vpop.f32.mrb[16].mxu1 }
  0xfe   :  { %v592_v9 = vadd.f32 %v544_v47, %v164_v52  ;;  %v594_v61 = vadd.f32 %v585_v3, %v237_v1  ;;  %v546_v51 = vpop.f32.mrb[17].mxu0  ;;  %v587_v0 = vpop.f32.mrb[17].mxu1 }
  0xff   :  { %v593_v50 = vadd.f32 %v546_v51, %v166_v45  ;;  %v595_v62 = vadd.f32 %v587_v0, %v239_v49  ;;  %v548_v29 = vpop.f32.mrb[18].mxu0  ;;  %v589_v48 = vpop.f32.mrb[18].mxu1 }
 0x100   :  { %v2899_v7 = vmul.f32 -1.442695, %v592_v9  ;;  %v549_v6 = vpop.f32.mrb[19].mxu0  ;;  %v590_v46 = vpop.f32.mrb[19].mxu1 }
 0x101   :  { %v2900_v54 = vmul.f32 -1.442695, %v593_v50  ;;  %v2901_v53 = vmul.f32 -1.442695, %v595_v62  ;;  %v4256_v6 = vmov 0  }
 0x102   :  { %3268 = vpow2.f32 %v2899_v7 }
 0x103   :  { %3270 = vpow2.f32 %v2900_v54 }
 0x104   :  { %3272 = vpow2.f32 %v2901_v53 }
 0x105   :  { %3274 = vtanh.f32 %v594_v61 }
 0x10c   :  { %v3269_v55 = vpop.eup %3268 }
 0x10d   :  { %v3271_v57 = vpop.eup %3270  ;;  %v599_v56 = vadd.f32 1.0, %v3269_v55 }
 0x10e   :  { %v605_v58 = vadd.f32 1.0, %v3271_v57  ;;  %v3273_v1 = vpop.eup %3272 }
 0x10f   :  { %3276 = vrcp.f32 %v599_v56  ;;  %v3275_v59 = vpop.eup %3274  ;;  %v612_v29 = vadd.f32 1.0, %v3273_v1 }
 0x110   :  { %3278 = vrcp.f32 %v605_v58 }
 0x111   :  { %3280 = vrcp.f32 %v612_v29 }
 0x119   :  { %v3277_v60 = vpop.eup %3276 }
 0x11a   :  { %v3279_v3 = vpop.eup %3278  ;;  %v617_v48 = vmul.f32 %v3277_v60, %v3275_v59 }
 0x11b   :  { %v616_v0 = vmul.f32 0.0, %v3279_v3  ;;  %v3281_v50 = vpop.eup %3280 }
 0x11d   :  { %v3790_v46 = vadd.f32 %v617_v48, %v616_v0 }
 0x11f   :  { %3282 = vtanh.f32 %v3790_v46 }
 0x129   :  { %v3283_v9 = vpop.eup %3282 }
 0x12a   :  { %v620_v49 = vmul.f32 %v3283_v9, %v3281_v50 }
 0x12c   :  { %623 = vst [vmem:[%s4232_s4] sm:$0xff] %v620_v49  ;;  %v632_v61 = vpack.c.bf16 %v620_v49, %v620_v49 }
 0x12e   :  { %858 = vmatmul.mubr.bf16.vlgmr.msra.gmra.mrb[20].mxu0 %v632_v61  ;;  %899 = vmatmul.mubr.bf16.vlgmr.msra.gmra.mrb[20].mxu1 %v632_v61 }
 0x12f   :  { %1142 = vmatpush1.bf16.msra.mxu0 %v3455_v10  ;;  %1183 = vmatpush1.bf16.msra.mxu1 %v3465_v12 }
 0x130   :  { %1143 = vmatprep.subr.bf16.mxu0 %v3477_v14  ;;  %1184 = vmatprep.subr.bf16.mxu1 %v3489_v16 }
 0x131   :  { %1173 = vmatprep.mubr.bf16.mxu0 %v4256_v6  ;;  %1214 = vmatprep.mubr.bf16.mxu1 %v4256_v6 }
 0x133   :  { %1144 = vmatpush1.bf16.msra.mxu0 %v3484_v15  ;;  %1185 = vmatpush1.bf16.msra.mxu1 %v3496_v17 }
 0x134   :  { %1145 = vmatprep.subr.bf16.mxu0 %v3503_v18  ;;  %1186 = vmatprep.subr.bf16.mxu1 %v3513_v20 }
 0x137   :  { %1146 = vmatpush1.bf16.msra.mxu0 %v3520_v21  ;;  %1187 = vmatpush1.bf16.msra.mxu1 %v3525_v22 }
 0x138   :  { %1147 = vmatprep.subr.bf16.mxu0 %v3532_v23  ;;  %1188 = vmatprep.subr.bf16.mxu1 %v3537_v24 }
 0x13b   :  { %1148 = vmatpush1.bf16.msra.mxu0 %v3544_v25  ;;  %1189 = vmatpush1.bf16.msra.mxu1 %v3551_v26 }
 0x13c   :  { %1149 = vmatprep.subr.bf16.mxu0 %v3558_v27  ;;  %1190 = vmatprep.subr.bf16.mxu1 %v3563_v28 }
 0x13f   :  { %1150 = vmatpush1.bf16.msra.mxu0 %v3573_v30  ;;  %1191 = vmatpush1.bf16.msra.mxu1 %v3578_v31 }
 0x140   :  { %1151 = vmatprep.subr.bf16.mxu0 %v3585_v32  ;;  %1192 = vmatprep.subr.bf16.mxu1 %v3592_v33 }
 0x143   :  { %1152 = vmatpush1.bf16.msra.mxu0 %v3599_v34  ;;  %1193 = vmatpush1.bf16.msra.mxu1 %v3604_v35 }
 0x144   :  { %1153 = vmatprep.subr.bf16.mxu0 %v3611_v36  ;;  %1194 = vmatprep.subr.bf16.mxu1 %v3618_v37 }
 0x147   :  { %1154 = vmatpush1.bf16.msra.mxu0 %v3628_v39  ;;  %1195 = vmatpush1.bf16.msra.mxu1 %v3633_v40 }
 0x148   :  { %1155 = vmatprep.subr.bf16.mxu0 %v3638_v41  ;;  %1196 = vmatprep.subr.bf16.mxu1 %v3643_v42 }
 0x14b   :  { %1156 = vmatpush1.bf16.msra.mxu0 %v3652_v43  ;;  %1197 = vmatpush1.bf16.msra.mxu1 %v3657_v44 }
 0x14c   :  { %1457 = vmatprep.subr.bf16.mxu0 %v3460_v11  ;;  %1498 = vmatprep.subr.bf16.mxu1 %v3470_v13 }
 0x201   :  { %v859_v52 = vpop.f32.mrb[20].mxu0  ;;  %v900_v45 = vpop.f32.mrb[20].mxu1 }
 0x202   :  { %v907_v47 = vadd.f32 %v859_v52, %v3716_v63  ;;  %v909_v51 = vadd.f32 %v900_v45, %v3719_v2  ;;  %v861_v62 = vpop.f32.mrb[21].mxu0  ;;  %v902_v7 = vpop.f32.mrb[21].mxu1 }
 0x203   :  { %v908_v54 = vadd.f32 %v861_v62, %v3721_v4  ;;  %v910_v53 = vadd.f32 %v902_v7, %v3724_v5  ;;  %v863_v55 = vpop.f32.mrb[22].mxu0  ;;  %v904_v57 = vpop.f32.mrb[22].mxu1  ;;  %v3913_v62 = vld [vmem:[%s4230_s2 + $0x24] ss:$16 sps:$4 sm:$0xff]   ;;  %v3918_v7 = vld [vmem:[%s4230_s2 + $0x2c] ss:$16 sps:$4 sm:$0xff]  }
 0x204   :  { %v2934_v56 = vmul.f32 -1.442695, %v907_v47  ;;  %v864_v58 = vpop.f32.mrb[23].mxu0  ;;  %v905_v1 = vpop.f32.mrb[23].mxu1  ;;  %v3899_v47 = vld [vmem:[%s4230_s2] ss:$16 sps:$4 sm:$0xff]  }
 0x205   :  { %v2935_v11 = vmul.f32 -1.442695, %v908_v54  ;;  %v2936_v13 = vmul.f32 -1.442695, %v910_v53  ;;  %v3923_v54 = vld [vmem:[%s4230_s2 + $0x20] ss:$16 sps:$4 sm:$0xff]  }
 0x206   :  { %3284 = vpow2.f32 %v2934_v56  ;;  %v3928_v53 = vld [vmem:[%s4230_s2 + $0x28] ss:$16 sps:$4 sm:$0xff]   ;;  %v3937_v55 = vld [vmem:[%s4230_s2 + $0x44] ss:$16 sps:$4 sm:$0xff]   ;;  %v3942_v57 = vld [vmem:[%s4230_s2 + $0x4c] ss:$16 sps:$4 sm:$0xff]  }
 0x207   :  { %3286 = vpow2.f32 %v2935_v11  ;;  %v3947_v56 = vld [vmem:[%s4230_s2 + $0x40] ss:$16 sps:$4 sm:$0xff]   ;;  %v3952_v58 = vld [vmem:[%s4230_s2 + $0x48] ss:$16 sps:$4 sm:$0xff]   ;;  %v3961_v1 = vld [vmem:[%s4230_s2 + $0x64] ss:$16 sps:$4 sm:$0xff]  }
 0x208   :  { %3288 = vpow2.f32 %v2936_v13  ;;  %v3966_v11 = vld [vmem:[%s4230_s2 + $0x6c] ss:$16 sps:$4 sm:$0xff]   ;;  %v3971_v13 = vld [vmem:[%s4230_s2 + $0x60] ss:$16 sps:$4 sm:$0xff]  }
 0x209   :  { %3290 = vtanh.f32 %v909_v51  ;;  %v3904_v51 = vld [vmem:[%s4230_s2 + $0x8] ss:$16 sps:$4 sm:$0xff]  }
 0x210   :  { %v3285_v59 = vpop.eup %3284 }
 0x211   :  { %v3287_v60 = vpop.eup %3286  ;;  %v914_v63 = vadd.f32 1.0, %v3285_v59  ;;  %v3976_v59 = vld [vmem:[%s4230_s2 + $0x68] ss:$16 sps:$4 sm:$0xff]  }
 0x212   :  { %v920_v2 = vadd.f32 1.0, %v3287_v60  ;;  %v3289_v4 = vpop.eup %3288  ;;  %v3985_v60 = vld [vmem:[%s4230_s2 + $0x84] ss:$16 sps:$4 sm:$0xff]  }
 0x213   :  { %3292 = vrcp.f32 %v914_v63  ;;  %v3291_v3 = vpop.eup %3290  ;;  %v927_v0 = vadd.f32 1.0, %v3289_v4  ;;  %v3990_v63 = vld [vmem:[%s4230_s2 + $0x8c] ss:$16 sps:$4 sm:$0xff]   ;;  %v4000_v4 = vld [vmem:[%s4230_s2 + $0x88] ss:$16 sps:$4 sm:$0xff]  }
 0x214   :  { %3294 = vrcp.f32 %v920_v2  ;;  %v3995_v2 = vld [vmem:[%s4230_s2 + $0x80] ss:$16 sps:$4 sm:$0xff]  }
 0x215   :  { %3296 = vrcp.f32 %v927_v0  ;;  %v4030_v0 = vld [vmem:[%s4230_s2 + $0xc4] ss:$16 sps:$4 sm:$0xff]  }
 0x21d   :  { %v3293_v5 = vpop.eup %3292 }
 0x21e   :  { %v3295_v48 = vpop.eup %3294  ;;  %v932_v29 = vmul.f32 %v3293_v5, %v3291_v3  ;;  %v4007_v3 = vld [vmem:[%s4230_s2 + $0xa4] ss:$16 sps:$4 sm:$0xff]   ;;  %v4014_v5 = vld [vmem:[%s4230_s2 + $0xa0] ss:$16 sps:$4 sm:$0xff]  }
 0x21f   :  { %v931_v50 = vmul.f32 %v3295_v48, %v3790_v46  ;;  %v3297_v49 = vpop.eup %3296  ;;  %v3894_v46 = vld [vmem:[%s4230_s2 + $0xc] ss:$16 sps:$4 sm:$0xff]   ;;  %v4019_v48 = vld [vmem:[%s4230_s2 + $0xa8] ss:$16 sps:$4 sm:$0xff]  }
 0x221   :  { %v3835_v9 = vadd.f32 %v932_v29, %v931_v50  ;;  %v4024_v29 = vld [vmem:[%s4230_s2 + $0xac] ss:$16 sps:$4 sm:$0xff]  }
 0x222   :  { %v4035_v50 = vld [vmem:[%s4230_s2 + $0xcc] ss:$16 sps:$4 sm:$0xff]  }
 0x223   :  { %3298 = vtanh.f32 %v3835_v9 }
 0x22d   :  { %v3299_v61 = vpop.eup %3298 }
 0x22e   :  { %v935_v52 = vmul.f32 %v3299_v61, %v3297_v49  ;;  %v4048_v49 = vld [vmem:[%s4230_s2 + $0xc8] ss:$16 sps:$4 sm:$0xff]   ;;  %v4055_v61 = vld [vmem:[%s4230_s2 + $0xe4] ss:$16 sps:$4 sm:$0xff]  }
 0x230   :  { %2937 = vst [vmem:[%s4232_s4 + $0x8] sm:$0xff] %v935_v52  ;;  %v948_v45 = vpack.c.bf16 %v935_v52, %v935_v52  ;;  %v4060_v52 = vld [vmem:[%s4230_s2 + $0xec] ss:$16 sps:$4 sm:$0xff]  }
 0x232   :  { %1174 = vmatmul.mubr.bf16.vlgmr.msra.gmra.mrb[24].mxu0 %v948_v45  ;;  %1215 = vmatmul.mubr.bf16.vlgmr.msra.gmra.mrb[24].mxu1 %v948_v45  ;;  %v4067_v45 = vld [vmem:[%s4230_s2 + $0xe0] ss:$16 sps:$4 sm:$0xff]  }
 0x233   :  { %1458 = vmatpush1.bf16.msra.mxu0 %v3455_v10  ;;  %1499 = vmatpush1.bf16.msra.mxu1 %v3465_v12 }
 0x234   :  { %1459 = vmatprep.subr.bf16.mxu0 %v3477_v14  ;;  %1500 = vmatprep.subr.bf16.mxu1 %v3489_v16 }
 0x235   :  { %1489 = vmatprep.mubr.bf16.mxu0 %v4256_v6  ;;  %1530 = vmatprep.mubr.bf16.mxu1 %v4256_v6 }
 0x237   :  { %1460 = vmatpush1.bf16.msra.mxu0 %v3484_v15  ;;  %1501 = vmatpush1.bf16.msra.mxu1 %v3496_v17 }
 0x238   :  { %1461 = vmatprep.subr.bf16.mxu0 %v3503_v18  ;;  %1502 = vmatprep.subr.bf16.mxu1 %v3513_v20  ;;  %v4257_v20 = vld [vmem:[#allocation5_spill] sm:$0xff] }
 0x23b   :  { %1462 = vmatpush1.bf16.msra.mxu0 %v3520_v21  ;;  %1503 = vmatpush1.bf16.msra.mxu1 %v3525_v22 }
 0x23c   :  { %1463 = vmatprep.subr.bf16.mxu0 %v3532_v23  ;;  %1504 = vmatprep.subr.bf16.mxu1 %v3537_v24 }
 0x23f   :  { %1464 = vmatpush1.bf16.msra.mxu0 %v3544_v25  ;;  %1505 = vmatpush1.bf16.msra.mxu1 %v3551_v26 }
 0x240   :  { %1465 = vmatprep.subr.bf16.mxu0 %v3558_v27  ;;  %1506 = vmatprep.subr.bf16.mxu1 %v3563_v28 }
 0x243   :  { %1466 = vmatpush1.bf16.msra.mxu0 %v3573_v30  ;;  %1507 = vmatpush1.bf16.msra.mxu1 %v3578_v31 }
 0x244   :  { %1467 = vmatprep.subr.bf16.mxu0 %v3585_v32  ;;  %1508 = vmatprep.subr.bf16.mxu1 %v3592_v33 }
 0x247   :  { %1468 = vmatpush1.bf16.msra.mxu0 %v3599_v34  ;;  %1509 = vmatpush1.bf16.msra.mxu1 %v3604_v35 }
 0x248   :  { %1469 = vmatprep.subr.bf16.mxu0 %v3611_v36  ;;  %1510 = vmatprep.subr.bf16.mxu1 %v3618_v37 }
 0x24b   :  { %1470 = vmatpush1.bf16.msra.mxu0 %v3628_v39  ;;  %1511 = vmatpush1.bf16.msra.mxu1 %v3633_v40 }
 0x24c   :  { %1471 = vmatprep.subr.bf16.mxu0 %v3638_v41  ;;  %1512 = vmatprep.subr.bf16.mxu1 %v3643_v42 }
 0x24f   :  { %1472 = vmatpush1.bf16.msra.mxu0 %v3652_v43  ;;  %1513 = vmatpush1.bf16.msra.mxu1 %v3657_v44 }
 0x250   :  { %1814 = vmatprep.subr.bf16.mxu1 %v3894_v46 }
 0x305   :  { %v1175_v10 = vpop.f32.mrb[24].mxu0  ;;  %v1216_v12 = vpop.f32.mrb[24].mxu1 }
 0x306   :  { %v1223_v14 = vadd.f32 %v1175_v10, %v3726_v8  ;;  %v1225_v15 = vadd.f32 %v1216_v12, %v3729_v19  ;;  %v1177_v16 = vpop.f32.mrb[25].mxu0  ;;  %v1218_v17 = vpop.f32.mrb[25].mxu1  ;;  %v4072_v10 = vld [vmem:[%s4230_s2 + $0xe8] ss:$16 sps:$4 sm:$0xff]  }
 0x307   :  { %v1224_v18 = vadd.f32 %v1177_v16, %v3731_v38  ;;  %v1226_v21 = vadd.f32 %v1218_v17, %v4257_v20  ;;  %v1179_v22 = vpop.f32.mrb[26].mxu0  ;;  %v1220_v23 = vpop.f32.mrb[26].mxu1  ;;  %v3889_v38 = vld [vmem:[%s4230_s2 + $0x4] ss:$16 sps:$4 sm:$0xff]  }
 0x308   :  { %v2970_v24 = vmul.f32 -1.442695, %v1223_v14  ;;  %v1180_v25 = vpop.f32.mrb[27].mxu0  ;;  %v1221_v26 = vpop.f32.mrb[27].mxu1  ;;  %1773 = vmatprep.subr.bf16.mxu0 %v3889_v38  ;;  %v4259_v17 = vld [vmem:[#allocation7_spill] sm:$0xff]  ;;  %v4260_v22 = vld [vmem:[#allocation8_spill] sm:$0xff] }
 0x309   :  { %v2971_v27 = vmul.f32 -1.442695, %v1224_v18  ;;  %v2972_v28 = vmul.f32 -1.442695, %v1226_v21 }
 0x30a   :  { %3300 = vpow2.f32 %v2970_v24  ;;  %v4261_v24 = vld [vmem:[#allocation9_spill] sm:$0xff] }
 0x30b   :  { %3302 = vpow2.f32 %v2971_v27 }
 0x30c   :  { %3304 = vpow2.f32 %v2972_v28 }
 0x30d   :  { %3306 = vtanh.f32 %v1225_v15  ;;  %v4258_v15 = vld [vmem:[#allocation6_spill] sm:$0xff] }
 0x314   :  { %v3301_v30 = vpop.eup %3300 }
 0x315   :  { %v3303_v31 = vpop.eup %3302  ;;  %v1230_v32 = vadd.f32 1.0, %v3301_v30 }
 0x316   :  { %v1236_v33 = vadd.f32 1.0, %v3303_v31  ;;  %v3305_v34 = vpop.eup %3304 }
 0x317   :  { %3308 = vrcp.f32 %v1230_v32  ;;  %v3307_v35 = vpop.eup %3306  ;;  %v1243_v40 = vadd.f32 1.0, %v3305_v34 }
 0x318   :  { %3310 = vrcp.f32 %v1236_v33 }
 0x319   :  { %3312 = vrcp.f32 %v1243_v40 }
 0x321   :  { %v3309_v36 = vpop.eup %3308 }
 0x322   :  { %v3311_v37 = vpop.eup %3310  ;;  %v1248_v39 = vmul.f32 %v3309_v36, %v3307_v35 }
 0x323   :  { %v1247_v41 = vmul.f32 %v3311_v37, %v3835_v9  ;;  %v3313_v43 = vpop.eup %3312  ;;  %v4043_v9 = vld [vmem:[%s4230_s2 + $0xc0] ss:$16 sps:$4 sm:$0xff]  }
 0x325   :  { %v3878_v42 = vadd.f32 %v1248_v39, %v1247_v41 }
 0x327   :  { %3314 = vtanh.f32 %v3878_v42 }
 0x331   :  { %v3315_v44 = vpop.eup %3314 }
 0x332   :  { %v1251_v8 = vmul.f32 %v3315_v44, %v3313_v43 }
 0x334   :  { %2973 = vst [vmem:[%s4232_s4 + $0x10] sm:$0xff] %v1251_v8  ;;  %v1264_v19 = vpack.c.bf16 %v1251_v8, %v1251_v8 }
 0x336   :  { %1490 = vmatmul.mubr.bf16.vlgmr.msra.gmra.mrb[28].mxu0 %v1264_v19  ;;  %1531 = vmatmul.mubr.bf16.vlgmr.msra.gmra.mrb[28].mxu1 %v1264_v19 }
 0x337   :  { %1805 = vmatprep.mubr.bf16.mxu0 %v4256_v6  ;;  %1846 = vmatprep.mubr.bf16.mxu1 %v4256_v6 }
 0x338   :  { %1774 = vmatpush1.bf16.msra.mxu0 %v3899_v47  ;;  %1815 = vmatpush1.bf16.msra.mxu1 %v3904_v51 }
 0x339   :  { %1775 = vmatprep.subr.bf16.mxu0 %v3913_v62  ;;  %1816 = vmatprep.subr.bf16.mxu1 %v3918_v7 }
 0x33c   :  { %1776 = vmatpush1.bf16.msra.mxu0 %v3923_v54  ;;  %1817 = vmatpush1.bf16.msra.mxu1 %v3928_v53 }
 0x33d   :  { %1777 = vmatprep.subr.bf16.mxu0 %v3937_v55  ;;  %1818 = vmatprep.subr.bf16.mxu1 %v3942_v57 }
 0x340   :  { %1778 = vmatpush1.bf16.msra.mxu0 %v3947_v56  ;;  %1819 = vmatpush1.bf16.msra.mxu1 %v3952_v58 }
 0x341   :  { %1779 = vmatprep.subr.bf16.mxu0 %v3961_v1  ;;  %1820 = vmatprep.subr.bf16.mxu1 %v3966_v11 }
 0x344   :  { %1780 = vmatpush1.bf16.msra.mxu0 %v3971_v13  ;;  %1821 = vmatpush1.bf16.msra.mxu1 %v3976_v59 }
 0x345   :  { %1781 = vmatprep.subr.bf16.mxu0 %v3985_v60  ;;  %1822 = vmatprep.subr.bf16.mxu1 %v3990_v63 }
 0x348   :  { %1782 = vmatpush1.bf16.msra.mxu0 %v3995_v2  ;;  %1823 = vmatpush1.bf16.msra.mxu1 %v4000_v4 }
 0x349   :  { %1783 = vmatprep.subr.bf16.mxu0 %v4007_v3  ;;  %1824 = vmatprep.subr.bf16.mxu1 %v4024_v29 }
 0x34c   :  { %1784 = vmatpush1.bf16.msra.mxu0 %v4014_v5  ;;  %1825 = vmatpush1.bf16.msra.mxu1 %v4019_v48 }
 0x34d   :  { %1785 = vmatprep.subr.bf16.mxu0 %v4030_v0  ;;  %1826 = vmatprep.subr.bf16.mxu1 %v4035_v50 }
 0x350   :  { %1786 = vmatpush1.bf16.msra.mxu0 %v4043_v9  ;;  %1827 = vmatpush1.bf16.msra.mxu1 %v4048_v49 }
 0x351   :  { %1787 = vmatprep.subr.bf16.mxu0 %v4055_v61  ;;  %1828 = vmatprep.subr.bf16.mxu1 %v4060_v52 }
 0x354   :  { %1788 = vmatpush1.bf16.msra.mxu0 %v4067_v45  ;;  %1829 = vmatpush1.bf16.msra.mxu1 %v4072_v10 }
 0x355   :  { %2089 = vmatprep.subr.bf16.mxu0 %v3889_v38  ;;  %2130 = vmatprep.subr.bf16.mxu1 %v3894_v46 }
 0x409   :  { %v1491_v12 = vpop.f32.mrb[28].mxu0  ;;  %v1532_v14 = vpop.f32.mrb[28].mxu1 }
 0x40a   :  { %v1539_v16 = vadd.f32 %v1491_v12, %v4258_v15  ;;  %v1541_v18 = vadd.f32 %v1532_v14, %v4259_v17  ;;  %v1493_v20 = vpop.f32.mrb[29].mxu0  ;;  %v1534_v21 = vpop.f32.mrb[29].mxu1 }
 0x40b   :  { %v1540_v23 = vadd.f32 %v1493_v20, %v4260_v22  ;;  %v1542_v25 = vadd.f32 %v1534_v21, %v4261_v24  ;;  %v1495_v26 = vpop.f32.mrb[30].mxu0  ;;  %v1536_v27 = vpop.f32.mrb[30].mxu1  ;;  %v4262_v20 = vld [vmem:[#allocation10_spill] sm:$0xff]  ;;  %v4263_v22 = vld [vmem:[#allocation11_spill] sm:$0xff] }
 0x40c   :  { %v3006_v28 = vmul.f32 -1.442695, %v1539_v16  ;;  %v1496_v30 = vpop.f32.mrb[31].mxu0  ;;  %v1537_v31 = vpop.f32.mrb[31].mxu1  ;;  %v4264_v26 = vld [vmem:[#allocation12_spill] sm:$0xff] }
 0x40d   :  { %v3007_v32 = vmul.f32 -1.442695, %v1540_v23  ;;  %v3008_v33 = vmul.f32 -1.442695, %v1542_v25 }
 0x40e   :  { %3316 = vpow2.f32 %v3006_v28  ;;  %v4265_v28 = vld [vmem:[#allocation13_spill] sm:$0xff] }
 0x40f   :  { %3318 = vpow2.f32 %v3007_v32 }
 0x410   :  { %3320 = vpow2.f32 %v3008_v33 }
 0x411   :  { %3322 = vtanh.f32 %v1541_v18 }
 0x418   :  { %v3317_v34 = vpop.eup %3316 }
 0x419   :  { %v3319_v35 = vpop.eup %3318  ;;  %v1546_v36 = vadd.f32 1.0, %v3317_v34 }
 0x41a   :  { %v1552_v37 = vadd.f32 1.0, %v3319_v35  ;;  %v3321_v39 = vpop.eup %3320 }
 0x41b   :  { %3324 = vrcp.f32 %v1546_v36  ;;  %v3323_v40 = vpop.eup %3322  ;;  %v1559_v8 = vadd.f32 1.0, %v3321_v39 }
 0x41c   :  { %3326 = vrcp.f32 %v1552_v37 }
 0x41d   :  { %3328 = vrcp.f32 %v1559_v8 }
 0x425   :  { %v3325_v41 = vpop.eup %3324 }
 0x426   :  { %v3327_v43 = vpop.eup %3326  ;;  %v1564_v44 = vmul.f32 %v3325_v41, %v3323_v40 }
 0x427   :  { %v1563_v19 = vmul.f32 %v3327_v43, %v3878_v42  ;;  %v3329_v14 = vpop.eup %3328 }
 0x429   :  { %v4085_v12 = vadd.f32 %v1564_v44, %v1563_v19 }
 0x42b   :  { %3330 = vtanh.f32 %v4085_v12 }
 0x435   :  { %v3331_v15 = vpop.eup %3330 }
 0x436   :  { %v1567_v16 = vmul.f32 %v3331_v15, %v3329_v14 }
 0x438   :  { %3009 = vst [vmem:[%s4232_s4 + $0x18] sm:$0xff] %v1567_v16  ;;  %v1580_v17 = vpack.c.bf16 %v1567_v16, %v1567_v16 }
 0x43a   :  { %1806 = vmatmul.mubr.bf16.vlgmr.msra.gmra.mrb[32].mxu0 %v1580_v17  ;;  %1847 = vmatmul.mubr.bf16.vlgmr.msra.gmra.mrb[32].mxu1 %v1580_v17 }
 0x43b   :  { %2090 = vmatpush1.bf16.msra.mxu0 %v3899_v47  ;;  %2131 = vmatpush1.bf16.msra.mxu1 %v3904_v51 }
 0x43c   :  { %2091 = vmatprep.subr.bf16.mxu0 %v3913_v62  ;;  %2132 = vmatprep.subr.bf16.mxu1 %v3918_v7 }
 0x43d   :  { %2121 = vmatprep.mubr.bf16.mxu0 %v4256_v6  ;;  %2162 = vmatprep.mubr.bf16.mxu1 %v4256_v6 }
 0x43f   :  { %2092 = vmatpush1.bf16.msra.mxu0 %v3923_v54  ;;  %2133 = vmatpush1.bf16.msra.mxu1 %v3928_v53 }
 0x440   :  { %2093 = vmatprep.subr.bf16.mxu0 %v3937_v55  ;;  %2134 = vmatprep.subr.bf16.mxu1 %v3942_v57 }
 0x443   :  { %2094 = vmatpush1.bf16.msra.mxu0 %v3947_v56  ;;  %2135 = vmatpush1.bf16.msra.mxu1 %v3952_v58 }
 0x444   :  { %2095 = vmatprep.subr.bf16.mxu0 %v3961_v1  ;;  %2136 = vmatprep.subr.bf16.mxu1 %v3966_v11 }
 0x447   :  { %2096 = vmatpush1.bf16.msra.mxu0 %v3971_v13  ;;  %2137 = vmatpush1.bf16.msra.mxu1 %v3976_v59 }
 0x448   :  { %2097 = vmatprep.subr.bf16.mxu0 %v3985_v60  ;;  %2138 = vmatprep.subr.bf16.mxu1 %v3990_v63 }
 0x44b   :  { %2098 = vmatpush1.bf16.msra.mxu0 %v3995_v2  ;;  %2139 = vmatpush1.bf16.msra.mxu1 %v4000_v4 }
 0x44c   :  { %2099 = vmatprep.subr.bf16.mxu0 %v4007_v3  ;;  %2140 = vmatprep.subr.bf16.mxu1 %v4024_v29 }
 0x44f   :  { %2100 = vmatpush1.bf16.msra.mxu0 %v4014_v5  ;;  %2141 = vmatpush1.bf16.msra.mxu1 %v4019_v48 }
 0x450   :  { %2101 = vmatprep.subr.bf16.mxu0 %v4030_v0  ;;  %2142 = vmatprep.subr.bf16.mxu1 %v4035_v50 }
 0x453   :  { %2102 = vmatpush1.bf16.msra.mxu0 %v4043_v9  ;;  %2143 = vmatpush1.bf16.msra.mxu1 %v4048_v49 }
 0x454   :  { %2103 = vmatprep.subr.bf16.mxu0 %v4055_v61  ;;  %2144 = vmatprep.subr.bf16.mxu1 %v4060_v52 }
 0x457   :  { %2104 = vmatpush1.bf16.msra.mxu0 %v4067_v45  ;;  %2145 = vmatpush1.bf16.msra.mxu1 %v4072_v10 }
 0x458   :  { %2405 = vmatprep.subr.bf16.mxu0 %v3889_v38  ;;  %2446 = vmatprep.subr.bf16.mxu1 %v3894_v46 }
 0x50d   :  { %v1807_v42 = vpop.f32.mrb[32].mxu0  ;;  %v1848_v18 = vpop.f32.mrb[32].mxu1 }
 0x50e   :  { %v1855_v21 = vadd.f32 %v1807_v42, %v4262_v20  ;;  %v1857_v23 = vadd.f32 %v1848_v18, %v4263_v22  ;;  %v1809_v24 = vpop.f32.mrb[33].mxu0  ;;  %v1850_v25 = vpop.f32.mrb[33].mxu1 }
 0x50f   :  { %v1856_v27 = vadd.f32 %v1809_v24, %v4264_v26  ;;  %v1858_v30 = vadd.f32 %v1850_v25, %v4265_v28  ;;  %v1811_v31 = vpop.f32.mrb[34].mxu0  ;;  %v1852_v32 = vpop.f32.mrb[34].mxu1  ;;  %v4266_v24 = vld [vmem:[#allocation14_spill] sm:$0xff]  ;;  %v4267_v26 = vld [vmem:[#allocation15_spill] sm:$0xff] }
 0x510   :  { %v3042_v33 = vmul.f32 -1.442695, %v1855_v21  ;;  %v1812_v34 = vpop.f32.mrb[35].mxu0  ;;  %v1853_v35 = vpop.f32.mrb[35].mxu1  ;;  %v4268_v31 = vld [vmem:[#allocation16_spill] sm:$0xff] }
 0x511   :  { %v3043_v36 = vmul.f32 -1.442695, %v1856_v27  ;;  %v3044_v37 = vmul.f32 -1.442695, %v1858_v30 }
 0x512   :  { %3332 = vpow2.f32 %v3042_v33  ;;  %v4269_v33 = vld [vmem:[#allocation17_spill] sm:$0xff] }
 0x513   :  { %3334 = vpow2.f32 %v3043_v36 }
 0x514   :  { %3336 = vpow2.f32 %v3044_v37 }
 0x515   :  { %3338 = vtanh.f32 %v1857_v23 }
 0x51c   :  { %v3333_v39 = vpop.eup %3332 }
 0x51d   :  { %v3335_v40 = vpop.eup %3334  ;;  %v1862_v41 = vadd.f32 1.0, %v3333_v39 }
 0x51e   :  { %v1868_v43 = vadd.f32 1.0, %v3335_v40  ;;  %v3337_v44 = vpop.eup %3336 }
 0x51f   :  { %3340 = vrcp.f32 %v1862_v41  ;;  %v3339_v8 = vpop.eup %3338  ;;  %v1875_v16 = vadd.f32 1.0, %v3337_v44 }
 0x520   :  { %3342 = vrcp.f32 %v1868_v43 }
 0x521   :  { %3344 = vrcp.f32 %v1875_v16 }
 0x529   :  { %v3341_v19 = vpop.eup %3340 }
 0x52a   :  { %v3343_v14 = vpop.eup %3342  ;;  %v1880_v15 = vmul.f32 %v3341_v19, %v3339_v8 }
 0x52b   :  { %v1879_v17 = vmul.f32 %v3343_v14, %v4085_v12  ;;  %v3345_v18 = vpop.eup %3344 }
 0x52d   :  { %v4130_v42 = vadd.f32 %v1880_v15, %v1879_v17 }
 0x52f   :  { %3346 = vtanh.f32 %v4130_v42 }
 0x539   :  { %v3347_v20 = vpop.eup %3346 }
 0x53a   :  { %v1883_v21 = vmul.f32 %v3347_v20, %v3345_v18 }
 0x53c   :  { %3045 = vst [vmem:[%s4232_s4 + $0x20] sm:$0xff] %v1883_v21  ;;  %v1896_v22 = vpack.c.bf16 %v1883_v21, %v1883_v21 }
 0x53e   :  { %2122 = vmatmul.mubr.bf16.vlgmr.msra.gmra.mrb[36].mxu0 %v1896_v22  ;;  %2163 = vmatmul.mubr.bf16.vlgmr.msra.gmra.mrb[36].mxu1 %v1896_v22 }
 0x53f   :  { %2406 = vmatpush1.bf16.msra.mxu0 %v3899_v47  ;;  %2447 = vmatpush1.bf16.msra.mxu1 %v3904_v51 }
 0x540   :  { %2407 = vmatprep.subr.bf16.mxu0 %v3913_v62  ;;  %2448 = vmatprep.subr.bf16.mxu1 %v3918_v7 }
 0x541   :  { %2437 = vmatprep.mubr.bf16.mxu0 %v4256_v6  ;;  %2478 = vmatprep.mubr.bf16.mxu1 %v4256_v6 }
 0x543   :  { %2408 = vmatpush1.bf16.msra.mxu0 %v3923_v54  ;;  %2449 = vmatpush1.bf16.msra.mxu1 %v3928_v53 }
 0x544   :  { %2409 = vmatprep.subr.bf16.mxu0 %v3937_v55  ;;  %2450 = vmatprep.subr.bf16.mxu1 %v3942_v57 }
 0x547   :  { %2410 = vmatpush1.bf16.msra.mxu0 %v3947_v56  ;;  %2451 = vmatpush1.bf16.msra.mxu1 %v3952_v58 }
 0x548   :  { %2411 = vmatprep.subr.bf16.mxu0 %v3961_v1  ;;  %2452 = vmatprep.subr.bf16.mxu1 %v3966_v11 }
 0x54b   :  { %2412 = vmatpush1.bf16.msra.mxu0 %v3971_v13  ;;  %2453 = vmatpush1.bf16.msra.mxu1 %v3976_v59 }
 0x54c   :  { %2413 = vmatprep.subr.bf16.mxu0 %v3985_v60  ;;  %2454 = vmatprep.subr.bf16.mxu1 %v3990_v63 }
 0x54f   :  { %2414 = vmatpush1.bf16.msra.mxu0 %v3995_v2  ;;  %2455 = vmatpush1.bf16.msra.mxu1 %v4000_v4 }
 0x550   :  { %2415 = vmatprep.subr.bf16.mxu0 %v4007_v3  ;;  %2456 = vmatprep.subr.bf16.mxu1 %v4024_v29 }
 0x553   :  { %2416 = vmatpush1.bf16.msra.mxu0 %v4014_v5  ;;  %2457 = vmatpush1.bf16.msra.mxu1 %v4019_v48 }
 0x554   :  { %2417 = vmatprep.subr.bf16.mxu0 %v4030_v0  ;;  %2458 = vmatprep.subr.bf16.mxu1 %v4035_v50 }
 0x557   :  { %2418 = vmatpush1.bf16.msra.mxu0 %v4043_v9  ;;  %2459 = vmatpush1.bf16.msra.mxu1 %v4048_v49 }
 0x558   :  { %2419 = vmatprep.subr.bf16.mxu0 %v4055_v61  ;;  %2460 = vmatprep.subr.bf16.mxu1 %v4060_v52 }
 0x55b   :  { %2420 = vmatpush1.bf16.msra.mxu0 %v4067_v45  ;;  %2461 = vmatpush1.bf16.msra.mxu1 %v4072_v10 }
 0x55c   :  { %2721 = vmatprep.subr.bf16.mxu0 %v3889_v38  ;;  %2762 = vmatprep.subr.bf16.mxu1 %v3894_v46 }
 0x611   :  { %v2123_v12 = vpop.f32.mrb[36].mxu0  ;;  %v2164_v23 = vpop.f32.mrb[36].mxu1 }
 0x612   :  { %v2171_v25 = vadd.f32 %v2123_v12, %v4266_v24  ;;  %v2173_v27 = vadd.f32 %v2164_v23, %v4267_v26  ;;  %v2125_v28 = vpop.f32.mrb[37].mxu0  ;;  %v2166_v30 = vpop.f32.mrb[37].mxu1 }
 0x613   :  { %v2172_v32 = vadd.f32 %v2125_v28, %v4268_v31  ;;  %v2174_v34 = vadd.f32 %v2166_v30, %v4269_v33  ;;  %v2127_v35 = vpop.f32.mrb[38].mxu0  ;;  %v2168_v36 = vpop.f32.mrb[38].mxu1  ;;  %v4274_v31 = vld [vmem:[#allocation22_spill] sm:$0xff]  ;;  %v4275_v33 = vld [vmem:[#allocation23_spill] sm:$0xff] }
 0x614   :  { %v3078_v37 = vmul.f32 -1.442695, %v2171_v25  ;;  %v2128_v39 = vpop.f32.mrb[39].mxu0  ;;  %v2169_v40 = vpop.f32.mrb[39].mxu1 }
 0x615   :  { %v3079_v38 = vmul.f32 -1.442695, %v2172_v32  ;;  %v3080_v46 = vmul.f32 -1.442695, %v2174_v34  ;;  %v4277_v40 = vld [vmem:[#allocation25_spill] sm:$0xff] }
 0x616   :  { %3348 = vpow2.f32 %v3078_v37  ;;  %v4276_v37 = vld [vmem:[#allocation24_spill] sm:$0xff] }
 0x617   :  { %3350 = vpow2.f32 %v3079_v38 }
 0x618   :  { %3352 = vpow2.f32 %v3080_v46 }
 0x619   :  { %3354 = vtanh.f32 %v2173_v27 }
 0x620   :  { %v3349_v41 = vpop.eup %3348 }
 0x621   :  { %v3351_v43 = vpop.eup %3350  ;;  %v2178_v44 = vadd.f32 1.0, %v3349_v41 }
 0x622   :  { %v2184_v8 = vadd.f32 1.0, %v3351_v43  ;;  %v3353_v19 = vpop.eup %3352 }
 0x623   :  { %3356 = vrcp.f32 %v2178_v44  ;;  %v3355_v14 = vpop.eup %3354  ;;  %v2191_v18 = vadd.f32 1.0, %v3353_v19 }
 0x624   :  { %3358 = vrcp.f32 %v2184_v8 }
 0x625   :  { %3360 = vrcp.f32 %v2191_v18 }
 0x62d   :  { %v3357_v15 = vpop.eup %3356 }
 0x62e   :  { %v3359_v16 = vpop.eup %3358  ;;  %v2196_v17 = vmul.f32 %v3357_v15, %v3355_v14 }
 0x62f   :  { %v2195_v20 = vmul.f32 %v3359_v16, %v4130_v42  ;;  %v3361_v22 = vpop.eup %3360 }
 0x631   :  { %v4175_v21 = vadd.f32 %v2196_v17, %v2195_v20 }
 0x633   :  { %3362 = vtanh.f32 %v4175_v21 }
 0x63d   :  { %v3363_v12 = vpop.eup %3362 }
 0x63e   :  { %v2199_v23 = vmul.f32 %v3363_v12, %v3361_v22 }
 0x640   :  { %3081 = vst [vmem:[%s4232_s4 + $0x28] sm:$0xff] %v2199_v23  ;;  %v2212_v24 = vpack.c.bf16 %v2199_v23, %v2199_v23 }
 0x642   :  { %2438 = vmatmul.mubr.bf16.vlgmr.msra.gmra.mrb[40].mxu0 %v2212_v24  ;;  %2479 = vmatmul.mubr.bf16.vlgmr.msra.gmra.mrb[40].mxu1 %v2212_v24 }
 0x643   :  { %2722 = vmatpush1.bf16.msra.mxu0 %v3899_v47  ;;  %2763 = vmatpush1.bf16.msra.mxu1 %v3904_v51  ;;  %v4270_v51 = vld [vmem:[#allocation18_spill] sm:$0xff] }
 0x644   :  { %2723 = vmatprep.subr.bf16.mxu0 %v3913_v62  ;;  %2764 = vmatprep.subr.bf16.mxu1 %v3918_v7  ;;  %v4271_v7 = vld [vmem:[#allocation19_spill] sm:$0xff] }
 0x645   :  { %2753 = vmatprep.mubr.bf16.mxu0 %v4256_v6  ;;  %2794 = vmatprep.mubr.bf16.mxu1 %v4256_v6 }
 0x647   :  { %2724 = vmatpush1.bf16.msra.mxu0 %v3923_v54  ;;  %2765 = vmatpush1.bf16.msra.mxu1 %v3928_v53 }
 0x648   :  { %2725 = vmatprep.subr.bf16.mxu0 %v3937_v55  ;;  %2766 = vmatprep.subr.bf16.mxu1 %v3942_v57  ;;  %v4272_v57 = vld [vmem:[#allocation20_spill] sm:$0xff] }
 0x64b   :  { %2726 = vmatpush1.bf16.msra.mxu0 %v3947_v56  ;;  %2767 = vmatpush1.bf16.msra.mxu1 %v3952_v58  ;;  %v4273_v58 = vld [vmem:[#allocation21_spill] sm:$0xff] }
 0x64c   :  { %2727 = vmatprep.subr.bf16.mxu0 %v3961_v1  ;;  %2768 = vmatprep.subr.bf16.mxu1 %v3966_v11 }
 0x64f   :  { %2728 = vmatpush1.bf16.msra.mxu0 %v3971_v13  ;;  %2769 = vmatpush1.bf16.msra.mxu1 %v3976_v59 }
 0x650   :  { %2729 = vmatprep.subr.bf16.mxu0 %v3985_v60  ;;  %2770 = vmatprep.subr.bf16.mxu1 %v3990_v63 }
 0x653   :  { %2730 = vmatpush1.bf16.msra.mxu0 %v3995_v2  ;;  %2771 = vmatpush1.bf16.msra.mxu1 %v4000_v4 }
 0x654   :  { %2731 = vmatprep.subr.bf16.mxu0 %v4007_v3  ;;  %2772 = vmatprep.subr.bf16.mxu1 %v4024_v29 }
 0x657   :  { %2732 = vmatpush1.bf16.msra.mxu0 %v4014_v5  ;;  %2773 = vmatpush1.bf16.msra.mxu1 %v4019_v48 }
 0x658   :  { %2733 = vmatprep.subr.bf16.mxu0 %v4030_v0  ;;  %2774 = vmatprep.subr.bf16.mxu1 %v4035_v50 }
 0x65b   :  { %2734 = vmatpush1.bf16.msra.mxu0 %v4043_v9  ;;  %2775 = vmatpush1.bf16.msra.mxu1 %v4048_v49 }
 0x65c   :  { %2735 = vmatprep.subr.bf16.mxu0 %v4055_v61  ;;  %2776 = vmatprep.subr.bf16.mxu1 %v4060_v52 }
 0x65f   :  { %2736 = vmatpush1.bf16.msra.mxu0 %v4067_v45  ;;  %2777 = vmatpush1.bf16.msra.mxu1 %v4072_v10 }
 0x715   :  { %v2439_v6 = vpop.f32.mrb[40].mxu0  ;;  %v2480_v47 = vpop.f32.mrb[40].mxu1 }
 0x716   :  { %v2487_v62 = vadd.f32 %v2439_v6, %v4270_v51  ;;  %v2489_v54 = vadd.f32 %v2480_v47, %v4271_v7  ;;  %v2441_v53 = vpop.f32.mrb[41].mxu0  ;;  %v2482_v55 = vpop.f32.mrb[41].mxu1 }
 0x717   :  { %v2488_v56 = vadd.f32 %v2441_v53, %v4272_v57  ;;  %v2490_v1 = vadd.f32 %v2482_v55, %v4273_v58  ;;  %v2443_v11 = vpop.f32.mrb[42].mxu0  ;;  %v2484_v13 = vpop.f32.mrb[42].mxu1 }
 0x718   :  { %v3114_v59 = vmul.f32 -1.442695, %v2487_v62  ;;  %v2444_v60 = vpop.f32.mrb[43].mxu0  ;;  %v2485_v63 = vpop.f32.mrb[43].mxu1 }
 0x719   :  { %v3115_v2 = vmul.f32 -1.442695, %v2488_v56  ;;  %v3116_v4 = vmul.f32 -1.442695, %v2490_v1 }
 0x71a   :  { %3364 = vpow2.f32 %v3114_v59 }
 0x71b   :  { %3366 = vpow2.f32 %v3115_v2 }
 0x71c   :  { %3368 = vpow2.f32 %v3116_v4 }
 0x71d   :  { %3370 = vtanh.f32 %v2489_v54 }
 0x724   :  { %v3365_v3 = vpop.eup %3364 }
 0x725   :  { %v3367_v5 = vpop.eup %3366  ;;  %v2494_v48 = vadd.f32 1.0, %v3365_v3 }
 0x726   :  { %v2500_v29 = vadd.f32 1.0, %v3367_v5  ;;  %v3369_v0 = vpop.eup %3368 }
 0x727   :  { %3372 = vrcp.f32 %v2494_v48  ;;  %v3371_v50 = vpop.eup %3370  ;;  %v2507_v52 = vadd.f32 1.0, %v3369_v0 }
 0x728   :  { %3374 = vrcp.f32 %v2500_v29 }
 0x729   :  { %3376 = vrcp.f32 %v2507_v52 }
 0x731   :  { %v3373_v9 = vpop.eup %3372 }
 0x732   :  { %v3375_v49 = vpop.eup %3374  ;;  %v2512_v61 = vmul.f32 %v3373_v9, %v3371_v50 }
 0x733   :  { %v2511_v45 = vmul.f32 %v3375_v49, %v4175_v21  ;;  %v3377_v42 = vpop.eup %3376 }
 0x735   :  { %v2513_v10 = vadd.f32 %v2512_v61, %v2511_v45 }
 0x737   :  { %3378 = vtanh.f32 %v2513_v10 }
 0x741   :  { %v3379_v25 = vpop.eup %3378 }
 0x742   :  { %v2515_v26 = vmul.f32 %v3379_v25, %v3377_v42 }
 0x744   :  { %3117 = vst [vmem:[%s4232_s4 + $0x30] sm:$0xff] %v2515_v26  ;;  %v2528_v27 = vpack.c.bf16 %v2515_v26, %v2515_v26 }
 0x746   :  { %2754 = vmatmul.mubr.bf16.vlgmr.msra.gmra.mrb[44].mxu0 %v2528_v27  ;;  %2795 = vmatmul.mubr.bf16.vlgmr.msra.gmra.mrb[44].mxu1 %v2528_v27 }
 0x819   :  { %v2755_v28 = vpop.f32.mrb[44].mxu0  ;;  %v2796_v30 = vpop.f32.mrb[44].mxu1 }
 0x81a   :  { %v2803_v32 = vadd.f32 %v2755_v28, %v4274_v31  ;;  %v2805_v34 = vadd.f32 %v2796_v30, %v4275_v33  ;;  %v2757_v35 = vpop.f32.mrb[45].mxu0  ;;  %v2798_v36 = vpop.f32.mrb[45].mxu1 }
 0x81b   :  { %v2804_v39 = vadd.f32 %v2757_v35, %v4276_v37  ;;  %v2806_v38 = vadd.f32 %v2798_v36, %v4277_v40  ;;  %v2759_v46 = vpop.f32.mrb[46].mxu0  ;;  %v2800_v41 = vpop.f32.mrb[46].mxu1 }
 0x81c   :  { %v3150_v43 = vmul.f32 -1.442695, %v2803_v32  ;;  %v2760_v44 = vpop.f32.mrb[47].mxu0  ;;  %v2801_v8 = vpop.f32.mrb[47].mxu1 }
 0x81d   :  { %v3151_v19 = vmul.f32 -1.442695, %v2804_v39  ;;  %v3152_v14 = vmul.f32 -1.442695, %v2806_v38 }
 0x81e   :  { %3380 = vpow2.f32 %v3150_v43 }
 0x81f   :  { %3382 = vpow2.f32 %v3151_v19 }
 0x820   :  { %3384 = vpow2.f32 %v3152_v14 }
 0x821   :  { %3386 = vtanh.f32 %v2805_v34 }
 0x828   :  { %v3381_v15 = vpop.eup %3380 }
 0x829   :  { %v3383_v16 = vpop.eup %3382  ;;  %v2810_v17 = vadd.f32 1.0, %v3381_v15 }
 0x82a   :  { %v2816_v18 = vadd.f32 1.0, %v3383_v16  ;;  %v3385_v20 = vpop.eup %3384 }
 0x82b   :  { %3388 = vrcp.f32 %v2810_v17  ;;  %v3387_v21 = vpop.eup %3386  ;;  %v2823_v24 = vadd.f32 1.0, %v3385_v20 }
 0x82c   :  { %3390 = vrcp.f32 %v2816_v18 }
 0x82d   :  { %3392 = vrcp.f32 %v2823_v24 }
 0x835   :  { %v3389_v22 = vpop.eup %3388 }
 0x836   :  { %v3391_v12 = vpop.eup %3390  ;;  %v2828_v23 = vmul.f32 %v3389_v22, %v3387_v21 }
 0x837   :  { %v2827_v6 = vmul.f32 %v3391_v12, %v2513_v10  ;;  %v3393_v51 = vpop.eup %3392 }
 0x839   :  { %v2829_v47 = vadd.f32 %v2828_v23, %v2827_v6 }
 0x83b   :  { %3394 = vtanh.f32 %v2829_v47 }
 0x845   :  { %v3395_v62 = vpop.eup %3394 }
 0x846   :  { %v2831_v7 = vmul.f32 %v3395_v62, %v3393_v51 }
 0x848   :  { %3153 = vst [vmem:[%s4232_s4 + $0x38] sm:$0xff] %v2831_v7 }

</bundles_post_ra>
